<compile_context>
chip_gen: v7x
topology: tpu7x:2x2x1
jax: 0.10.0
libtpu: 0.0.40
codegen_flags: <defaults>
</compile_context>

<pallas_src>
import functools

import jax
import jax.numpy as jnp
from jax import lax
from jax.experimental import pallas as pl
from jax.experimental.pallas import tpu as pltpu

NEG_INF = -1.0e9  # same masking constant as the PyTorch forward


def _reuse_kernel(threshold, gating_s, dim, token_tile,
                  pre_ref, hid_ref, q_ref, k_ref, v_ref,
                  simT_ref, cache_ref, imp_ref, mask_ref,
                  rmap_o, pre_o, hid_o, q_o, k_o, v_o):
    """One (batch, token-tile) step: similarity -> decision -> gated blend."""
    t = pl.program_id(1)

    x = pre_ref[0].astype(jnp.float32)                              # (TQ, D)

    # --- CosineSimilarity(exp=1) --------------------------------------------
    # Current tokens normalised in-kernel; cached side arrives pre-normalised &
    # pre-transposed (D, Mp) bf16, so the MXU dot needs no per-tile norm/transpose.
    eps2 = 1e-16                           # torch eps=1e-8 applied to the norm
    xn = x * lax.rsqrt(jnp.maximum(jnp.sum(x * x, axis=-1, keepdims=True), eps2))
    sim = jnp.dot(xn.astype(jnp.bfloat16), simT_ref[0],
                  preferred_element_type=jnp.float32)               # (TQ, Mp)
    sim = sim + mask_ref[0]          # additive 0 / -1e9 reference-frame mask

    # --- most-similar cached token: max + first-occurrence argmax ------------
    mp = sim.shape[-1]
    sim_max = jnp.max(sim, axis=-1, keepdims=True)                  # (TQ, 1)
    col = lax.broadcasted_iota(jnp.int32, sim.shape, 1)
    idx = jnp.min(jnp.where(sim >= sim_max, col, jnp.int32(mp)),
                  axis=-1, keepdims=True)                           # (TQ, 1)

    # --- ReuseThreshold decision + SteepSigmoid gating ------------------------
    imp = imp_ref[0]                                                # (TQ, 1) f32
    decision = jnp.tanh(sim_max - (threshold + imp))
    g = jax.nn.sigmoid(decision / gating_s)                         # (TQ, 1)

    # skip_cls: the CLS token (global index 0) is never reused -> gate = 0, which
    # turns the blend below into an exact passthrough for that row.
    row = lax.broadcasted_iota(jnp.int32, g.shape, 0)
    g = jnp.where(t * token_tile + row == 0, 0.0, g)

    # --- all five torch.gather calls + the 'upper' half of the blend as ONE
    #     wide bf16 MXU matmul; the gate is folded straight into the one-hot LHS.
    lhs = jnp.where(col == idx, g, 0.0).astype(jnp.bfloat16)        # (TQ, Mp)
    gathered = jnp.dot(lhs, cache_ref[0],
                       preferred_element_type=jnp.float32)          # (TQ, 5*D)

    lo = 1.0 - g
    rmap_o[0] = g   # lane-1 store; negligible bytes. TODO(synk): lane-dense if hot.
    pre_o[0] = (gathered[:, 0 * dim:1 * dim] + lo * x).astype(pre_o.dtype)
    hid_o[0] = (gathered[:, 1 * dim:2 * dim] + lo * hid_ref[0]).astype(hid_o.dtype)
    q_o[0] = (gathered[:, 2 * dim:3 * dim] + lo * q_ref[0]).astype(q_o.dtype)
    k_o[0] = (gathered[:, 3 * dim:4 * dim] + lo * k_ref[0]).astype(k_o.dtype)
    v_o[0] = (gathered[:, 4 * dim:5 * dim] + lo * v_ref[0]).astype(v_o.dtype)


def pack_reuse_cache(cached_states, ref_mask, num_tokens, *, pad_multiple=128):
    """One-time cache packing (do once per cache update, NOT once per frame).

    Returns (gather slab (B, Mp, 5D) bf16,
             pre-normalised & transposed cosine operand (B, D, Mp) bf16,
             additive frame mask (B, 1, Mp) f32), with the cached-token axis
    padded to a multiple of `pad_multiple` so both MXU matmuls run full tiles.
    Padded cache rows are masked with NEG_INF so they never win the argmax.
    """
    c_pre = cached_states[0]
    B, M, D = c_pre.shape
    assert M % num_tokens == 0, "cache must hold whole reference frames"
    R = M // num_tokens
    Mp = -(-M // pad_multiple) * pad_multiple

    slab = jnp.concatenate([c.astype(jnp.bfloat16) for c in cached_states], axis=-1)

    y = c_pre.astype(jnp.float32)
    inv = lax.rsqrt(jnp.maximum(jnp.sum(y * y, axis=-1, keepdims=True), 1e-16))
    simT = jnp.swapaxes((y * inv).astype(jnp.bfloat16), 1, 2)       # (B, D, M)

    rm = ref_mask[:, :R]
    mask_add = jnp.where(jnp.repeat(rm, num_tokens, axis=1),
                         0.0, NEG_INF).astype(jnp.float32)          # (B, M)

    if Mp != M:
        slab = jnp.pad(slab, ((0, 0), (0, Mp - M), (0, 0)))
        simT = jnp.pad(simT, ((0, 0), (0, 0), (0, Mp - M)))
        mask_add = jnp.pad(mask_add, ((0, 0), (0, Mp - M)), constant_values=NEG_INF)
    return slab, simT, mask_add.reshape(B, 1, Mp)


def _vmem_bytes(tq, D, Mp, in_bytes, out_bytes):
    """Rough per-step VMEM footprint for tile selection."""
    cur = 5 * tq * D * in_bytes * 2            # double-buffered current-state inputs
    out = 5 * tq * D * out_bytes * 2           # double-buffered outputs
    cache = (Mp * 5 * D + D * Mp) * 2 * 2      # bf16 gather slab + cosine operand
    tmp = tq * Mp * 4 * 3 + tq * 5 * D * 4     # sim / one-hot / gathered temporaries
    return cur + out + cache + tmp + (1 << 20)


def reuse_module_forward(cached_states, pre_proj, hidden_states, query_states,
                         key_states, value_states, attn_weights, ref_mask,
                         *, threshold=0.5, gating_s=0.25, out_dtype=None,
                         packed_cache=None, max_token_tile=None):
    """JAX/Pallas equivalent of ReuseModule.forward (defaults, skip_cls=True)."""
    B, N, D = hidden_states.shape
    assert D % 128 == 0, "lane slices of the packed gather result must be 128-aligned"
    if out_dtype is None:
        out_dtype = hidden_states.dtype        # bf16 in -> bf16 out: half the writeback
    if packed_cache is None:
        # TODO(synk): in production pack once per cache update, not per frame.
        packed_cache = pack_reuse_cache(cached_states, ref_mask, N)
    cache_slab, simT, mask_add = packed_cache
    Mp = cache_slab.shape[1]

    # CLSImportance(exp=2) from only the CLS attention row; the kernel never DMAs
    # the (B, H, N, N) tensor. Row 0 value is irrelevant (kernel forces gate=0).
    imp = jnp.mean(attn_weights[:, :, 0, :].astype(jnp.float32), axis=1) ** 2
    imp = imp[..., None]                                            # (B, N, 1)

    # --- generation-aware token tile + VMEM budget -----------------------------
    try:
        vmem_cap = int(pltpu.get_tpu_info().vmem_capacity_bytes)
    except Exception:
        vmem_cap = 64 * 1024 * 1024            # conservative (v7x-sized) fallback
    vmem_limit = min(int(vmem_cap * 0.8), 96 * 1024 * 1024)
    budget = int(vmem_limit * 0.8)
    if max_token_tile is None:
        small_vmem = vmem_cap <= 64 * 1024 * 1024                  # v7x-class part
        max_token_tile = (128 if (D >= 1024 or Mp >= 1024) else 256) if small_vmem else 512

    in_bytes = jnp.dtype(hidden_states.dtype).itemsize
    out_bytes = jnp.dtype(out_dtype).itemsize
    if N <= max_token_tile and _vmem_bytes(N, D, Mp, in_bytes, out_bytes) <= budget:
        tq = N
    else:
        tq = 8
        for c in (512, 384, 256, 128, 64, 32, 16, 8):
            if c <= max_token_tile and c < N and \
                    _vmem_bytes(c, D, Mp, in_bytes, out_bytes) <= budget:
                tq = c
                break
    n_tq = pl.cdiv(N, tq)

    cur_spec = pl.BlockSpec((1, tq, D), lambda b, t: (b, t, 0))
    narrow_spec = pl.BlockSpec((1, tq, 1), lambda b, t: (b, t, 0))
    simT_spec = pl.BlockSpec((1, D, Mp), lambda b, t: (b, 0, 0))     # const along t
    cache_spec = pl.BlockSpec((1, Mp, 5 * D), lambda b, t: (b, 0, 0))
    mask_spec = pl.BlockSpec((1, 1, Mp), lambda b, t: (b, 0, 0))
    # TODO(synk): on v7x, single-buffering cache/simT (pipeline_mode=pl.Buffered(1))
    # would halve their VMEM footprint; left at the default for portability.

    out_shape = (
        jax.ShapeDtypeStruct((B, N, 1), jnp.float32),
        *[jax.ShapeDtypeStruct((B, N, D), out_dtype) for _ in range(5)],
    )

    kernel = functools.partial(_reuse_kernel, float(threshold), float(gating_s), D, tq)

    outs = pl.pallas_call(
        kernel,
        out_shape=out_shape,
        grid_spec=pltpu.PrefetchScalarGridSpec(
            num_scalar_prefetch=0,
            grid=(B, n_tq),
            in_specs=[cur_spec] * 5 + [simT_spec, cache_spec, narrow_spec, mask_spec],
            out_specs=[narrow_spec] + [cur_spec] * 5,
        ),
        compiler_params=pltpu.CompilerParams(
            # No carried state across either axis (cache is read-only, output tiles
            # are disjoint) -> both axes parallel so v7x's two TCs split the work.
            dimension_semantics=("parallel", "parallel"),
            vmem_limit_bytes=vmem_limit,
        ),
    )(pre_proj, hidden_states, query_states, key_states, value_states,
      simT, cache_slab, imp, mask_add)

    reuse_map = outs[0][..., 0]                                      # (B, N)
    return (reuse_map, *outs[1:])


if __name__ == "__main__":
    key = jax.random.PRNGKey(0)
    B, H, N, D, R = 2, 4, 16, 128, 2
    M = R * N

    ks = jax.random.split(key, 11)
    rnd = lambda k, s: jax.random.normal(k, s, dtype=jnp.float32).astype(jnp.bfloat16)

    pre_proj = rnd(ks[0], (B, N, D))
    hidden = rnd(ks[1], (B, N, D))
    query = rnd(ks[2], (B, N, D))
    keyst = rnd(ks[3], (B, N, D))
    value = rnd(ks[4], (B, N, D))
    c_pre = rnd(ks[5], (B, M, D))
    c_hid = rnd(ks[6], (B, M, D))
    c_q = rnd(ks[7], (B, M, D))
    c_k = rnd(ks[8], (B, M, D))
    c_v = rnd(ks[9], (B, M, D))
    attn_weights = jax.nn.softmax(
        jax.random.normal(ks[10], (B, H, N, N), dtype=jnp.float32), axis=-1)
    ref_mask = jnp.array([[True, False], [True, True]])

    cached = (c_pre, c_hid, c_q, c_k, c_v)
    # Pack once (as production would, per cache update), then run one frame.
    packed = pack_reuse_cache(cached, ref_mask, N)
    outs = reuse_module_forward(
        cached, pre_proj, hidden, query, keyst, value, attn_weights, ref_mask,
        packed_cache=packed)
    outs = jax.block_until_ready(outs)

    reuse_map = outs[0]
    assert reuse_map.shape == (B, N)
    assert bool(jnp.all(reuse_map[:, 0] == 0.0))                    # CLS never reused
    assert bool(jnp.all((reuse_map >= 0.0) & (reuse_map <= 1.0)))
    assert bool(jnp.all(jnp.isfinite(reuse_map)))
    for t, src in zip(outs[1:], (pre_proj, hidden, query, keyst, value)):
        assert t.shape == (B, N, D) and t.dtype == src.dtype
        assert bool(jnp.all(t[:, 0] == src[:, 0]))                  # CLS passthrough
        assert bool(jnp.all(jnp.isfinite(t.astype(jnp.float32))))

    print("KERNEL_OK")
</pallas_src>

<mosaic_0001>
module attributes {stable_mosaic.version = 11 : i64} {
  func.func @_reuse_kernel(%arg0: i32, %arg1: i32, %arg2: memref<1x16x128xbf16, #tpu.memory_space<vmem>>, %arg3: memref<1x16x128xbf16, #tpu.memory_space<vmem>>, %arg4: memref<1x16x128xbf16, #tpu.memory_space<vmem>>, %arg5: memref<1x16x128xbf16, #tpu.memory_space<vmem>>, %arg6: memref<1x16x128xbf16, #tpu.memory_space<vmem>>, %arg7: memref<1x128x128xbf16, #tpu.memory_space<vmem>>, %arg8: memref<1x128x640xbf16, #tpu.memory_space<vmem>>, %arg9: memref<1x16x1xf32, #tpu.memory_space<vmem>>, %arg10: memref<1x1x128xf32, #tpu.memory_space<vmem>>, %arg11: memref<1x16x1xf32, #tpu.memory_space<vmem>>, %arg12: memref<1x16x128xbf16, #tpu.memory_space<vmem>>, %arg13: memref<1x16x128xbf16, #tpu.memory_space<vmem>>, %arg14: memref<1x16x128xbf16, #tpu.memory_space<vmem>>, %arg15: memref<1x16x128xbf16, #tpu.memory_space<vmem>>, %arg16: memref<1x16x128xbf16, #tpu.memory_space<vmem>>) attributes {dimension_semantics = [#tpu.dimension_semantics<parallel>, #tpu.dimension_semantics<parallel>], iteration_bounds = array<i64: 2, 1>, scalar_prefetch = 0 : i64, scratch_operands = 0 : i64, tpu.core_type = #tpu.core_type<tc>, window_params = [{transform_indices = @transform_0, window_bounds = array<i64: 1, 16, 128>}, {transform_indices = @transform_1, window_bounds = array<i64: 1, 16, 128>}, {transform_indices = @transform_2, window_bounds = array<i64: 1, 16, 128>}, {transform_indices = @transform_3, window_bounds = array<i64: 1, 16, 128>}, {transform_indices = @transform_4, window_bounds = array<i64: 1, 16, 128>}, {transform_indices = @transform_5, window_bounds = array<i64: 1, 128, 128>}, {transform_indices = @transform_6, window_bounds = array<i64: 1, 128, 640>}, {transform_indices = @transform_7, window_bounds = array<i64: 1, 16, 1>}, {transform_indices = @transform_8, window_bounds = array<i64: 1, 1, 128>}, {transform_indices = @transform_9, window_bounds = array<i64: 1, 16, 1>}, {transform_indices = @transform_10, window_bounds = array<i64: 1, 16, 128>}, {transform_indices = @transform_11, window_bounds = array<i64: 1, 16, 128>}, {transform_indices = @transform_12, window_bounds = array<i64: 1, 16, 128>}, {transform_indices = @transform_13, window_bounds = array<i64: 1, 16, 128>}, {transform_indices = @transform_14, window_bounds = array<i64: 1, 16, 128>}]} {
    %c0 = arith.constant 0 : index
    %c0_0 = arith.constant 0 : index
    %c0_1 = arith.constant 0 : index
    %0 = vector.load %arg2[%c0, %c0_0, %c0_1] : memref<1x16x128xbf16, #tpu.memory_space<vmem>>, vector<1x16x128xbf16>
    %1 = vector.shape_cast %0 : vector<1x16x128xbf16> to vector<16x128xbf16>
    %2 = arith.extf %1 : vector<16x128xbf16> to vector<16x128xf32>
    %3 = arith.mulf %2, %2 : vector<16x128xf32>
    %cst = arith.constant dense<0.000000e+00> : vector<16xf32>
    %4 = vector.multi_reduction <add>, %3, %cst [1] : vector<16x128xf32> to vector<16xf32>
    %5 = vector.shape_cast %4 : vector<16xf32> to vector<16x1xf32>
    %cst_2 = arith.constant 1.000000e-16 : f32
    %6 = vector.broadcast %cst_2 : f32 to vector<16x1xf32>
    %7 = arith.maximumf %5, %6 : vector<16x1xf32>
    %8 = math.rsqrt %7 : vector<16x1xf32>
    %9 = vector.broadcast %8 : vector<16x1xf32> to vector<16x128xf32>
    %10 = arith.mulf %2, %9 : vector<16x128xf32>
    %11 = arith.truncf %10 : vector<16x128xf32> to vector<16x128xbf16>
    %c0_3 = arith.constant 0 : index
    %c0_4 = arith.constant 0 : index
    %c0_5 = arith.constant 0 : index
    %12 = vector.load %arg7[%c0_3, %c0_4, %c0_5] : memref<1x128x128xbf16, #tpu.memory_space<vmem>>, vector<1x128x128xbf16>
    %13 = vector.shape_cast %12 : vector<1x128x128xbf16> to vector<128x128xbf16>
    %cst_6 = arith.constant dense<0.000000e+00> : vector<16x128xf32>
    %14 = tpu.matmul %11, %13, %cst_6 {dimension_numbers = #tpu.dot_dimension_numbers<[1], [0], [0], [1], [0, 0, 1, 1], [], []>} : vector<16x128xbf16>, vector<128x128xbf16>, vector<16x128xf32> -> vector<16x128xf32>
    %c0_7 = arith.constant 0 : index
    %c0_8 = arith.constant 0 : index
    %c0_9 = arith.constant 0 : index
    %15 = vector.load %arg10[%c0_7, %c0_8, %c0_9] : memref<1x1x128xf32, #tpu.memory_space<vmem>>, vector<1x1x128xf32>
    %16 = vector.shape_cast %15 : vector<1x1x128xf32> to vector<1x128xf32>
    %17 = vector.broadcast %16 : vector<1x128xf32> to vector<16x128xf32>
    %18 = arith.addf %14, %17 : vector<16x128xf32>
    %cst_10 = arith.constant dense<0xFF800000> : vector<16xf32>
    %19 = vector.multi_reduction <maximumf>, %18, %cst_10 [1] : vector<16x128xf32> to vector<16xf32>
    %20 = vector.shape_cast %19 : vector<16xf32> to vector<16x1xf32>
    %21 = tpu.iota {dimensions = array<i32: 1>} : vector<16x128xi32>
    %22 = vector.broadcast %20 : vector<16x1xf32> to vector<16x128xf32>
    %23 = arith.cmpf oge, %18, %22 : vector<16x128xf32>
    %c128_i32 = arith.constant 128 : i32
    %24 = vector.broadcast %c128_i32 : i32 to vector<16x128xi32>
    %25 = arith.select %23, %21, %24 : vector<16x128xi1>, vector<16x128xi32>
    %cst_11 = arith.constant dense<2147483647> : vector<16xi32>
    %26 = vector.multi_reduction <minsi>, %25, %cst_11 [1] : vector<16x128xi32> to vector<16xi32>
    %27 = vector.shape_cast %26 : vector<16xi32> to vector<16x1xi32>
    %c0_12 = arith.constant 0 : index
    %c0_13 = arith.constant 0 : index
    %c0_14 = arith.constant 0 : index
    %28 = vector.load %arg9[%c0_12, %c0_13, %c0_14] : memref<1x16x1xf32, #tpu.memory_space<vmem>>, vector<1x16x1xf32>
    %29 = vector.shape_cast %28 : vector<1x16x1xf32> to vector<16x1xf32>
    %cst_15 = arith.constant 5.000000e-01 : f32
    %30 = vector.broadcast %cst_15 : f32 to vector<16x1xf32>
    %31 = arith.addf %30, %29 : vector<16x1xf32>
    %32 = arith.subf %20, %31 : vector<16x1xf32>
    %33 = math.tanh %32 : vector<16x1xf32>
    %cst_16 = arith.constant 2.500000e-01 : f32
    %34 = vector.broadcast %cst_16 : f32 to vector<16x1xf32>
    %35 = arith.divf %33, %34 : vector<16x1xf32>
    %36 = arith.negf %35 : vector<16x1xf32>
    %37 = math.exp %36 : vector<16x1xf32>
    %cst_17 = arith.constant 1.000000e+00 : f32
    %38 = vector.broadcast %cst_17 : f32 to vector<16x1xf32>
    %39 = arith.addf %38, %37 : vector<16x1xf32>
    %40 = arith.divf %38, %39 : vector<16x1xf32>
    %41 = tpu.iota {dimensions = array<i32: 0>} : vector<16x1xi32>
    %c16_i32 = arith.constant 16 : i32
    %42 = arith.muli %arg1, %c16_i32 : i32
    %43 = vector.broadcast %42 : i32 to vector<16x1xi32>
    %44 = arith.addi %43, %41 : vector<16x1xi32>
    %c0_i32 = arith.constant 0 : i32
    %45 = vector.broadcast %c0_i32 : i32 to vector<16x1xi32>
    %46 = arith.cmpi eq, %44, %45 : vector<16x1xi32>
    %cst_18 = arith.constant 0.000000e+00 : f32
    %47 = vector.broadcast %cst_18 : f32 to vector<16x1xf32>
    %48 = arith.select %46, %47, %40 : vector<16x1xi1>, vector<16x1xf32>
    %49 = vector.broadcast %27 : vector<16x1xi32> to vector<16x128xi32>
    %50 = arith.cmpi eq, %21, %49 : vector<16x128xi32>
    %cst_19 = arith.constant 0.000000e+00 : f32
    %51 = vector.shape_cast %48 : vector<16x1xf32> to vector<16x1xf32>
    %52 = vector.broadcast %51 : vector<16x1xf32> to vector<16x128xf32>
    %53 = vector.broadcast %cst_19 : f32 to vector<16x128xf32>
    %54 = arith.select %50, %52, %53 : vector<16x128xi1>, vector<16x128xf32>
    %55 = arith.truncf %54 : vector<16x128xf32> to vector<16x128xbf16>
    %c0_20 = arith.constant 0 : index
    %c0_21 = arith.constant 0 : index
    %c0_22 = arith.constant 0 : index
    %56 = vector.load %arg8[%c0_20, %c0_21, %c0_22] : memref<1x128x640xbf16, #tpu.memory_space<vmem>>, vector<1x128x640xbf16>
    %57 = vector.shape_cast %56 : vector<1x128x640xbf16> to vector<128x640xbf16>
    %cst_23 = arith.constant dense<0.000000e+00> : vector<16x640xf32>
    %58 = tpu.matmul %55, %57, %cst_23 {dimension_numbers = #tpu.dot_dimension_numbers<[1], [0], [0], [1], [0, 0, 1, 1], [], []>} : vector<16x128xbf16>, vector<128x640xbf16>, vector<16x640xf32> -> vector<16x640xf32>
    %cst_24 = arith.constant 1.000000e+00 : f32
    %59 = vector.broadcast %cst_24 : f32 to vector<16x1xf32>
    %60 = arith.subf %59, %48 : vector<16x1xf32>
    %c0_25 = arith.constant 0 : index
    %c0_26 = arith.constant 0 : index
    %c0_27 = arith.constant 0 : index
    %61 = vector.load %arg11[%c0_25, %c0_26, %c0_27] : memref<1x16x1xf32, #tpu.memory_space<vmem>>, vector<1x16x1xf32>
    %62 = vector.shape_cast %61 : vector<1x16x1xf32> to vector<16x1xf32>
    %63 = vector.shape_cast %48 : vector<16x1xf32> to vector<1x16x1xf32>
    tpu.vector_store %arg11[%c0_25, %c0_26, %c0_27], %63 {strides = array<i32>} : memref<1x16x1xf32, #tpu.memory_space<vmem>>, vector<1x16x1xf32>,
    %64 = vector.extract_strided_slice %58 {offsets = [0, 0], sizes = [16, 128], strides = [1, 1]} : vector<16x640xf32> to vector<16x128xf32>
    %65 = vector.broadcast %60 : vector<16x1xf32> to vector<16x128xf32>
    %66 = arith.mulf %65, %2 : vector<16x128xf32>
    %67 = arith.addf %64, %66 : vector<16x128xf32>
    %68 = arith.truncf %67 : vector<16x128xf32> to vector<16x128xbf16>
    %c0_28 = arith.constant 0 : index
    %c0_29 = arith.constant 0 : index
    %c0_30 = arith.constant 0 : index
    %69 = vector.load %arg12[%c0_28, %c0_29, %c0_30] : memref<1x16x128xbf16, #tpu.memory_space<vmem>>, vector<1x16x128xbf16>
    %70 = vector.shape_cast %69 : vector<1x16x128xbf16> to vector<16x128xbf16>
    %71 = vector.shape_cast %68 : vector<16x128xbf16> to vector<1x16x128xbf16>
    tpu.vector_store %arg12[%c0_28, %c0_29, %c0_30], %71 {strides = array<i32>} : memref<1x16x128xbf16, #tpu.memory_space<vmem>>, vector<1x16x128xbf16>,
    %72 = vector.extract_strided_slice %58 {offsets = [0, 128], sizes = [16, 128], strides = [1, 1]} : vector<16x640xf32> to vector<16x128xf32>
    %c0_31 = arith.constant 0 : index
    %c0_32 = arith.constant 0 : index
    %c0_33 = arith.constant 0 : index
    %73 = vector.load %arg3[%c0_31, %c0_32, %c0_33] : memref<1x16x128xbf16, #tpu.memory_space<vmem>>, vector<1x16x128xbf16>
    %74 = vector.shape_cast %73 : vector<1x16x128xbf16> to vector<16x128xbf16>
    %75 = arith.extf %74 : vector<16x128xbf16> to vector<16x128xf32>
    %76 = vector.broadcast %60 : vector<16x1xf32> to vector<16x128xf32>
    %77 = arith.mulf %76, %75 : vector<16x128xf32>
    %78 = arith.addf %72, %77 : vector<16x128xf32>
    %79 = arith.truncf %78 : vector<16x128xf32> to vector<16x128xbf16>
    %c0_34 = arith.constant 0 : index
    %c0_35 = arith.constant 0 : index
    %c0_36 = arith.constant 0 : index
    %80 = vector.load %arg13[%c0_34, %c0_35, %c0_36] : memref<1x16x128xbf16, #tpu.memory_space<vmem>>, vector<1x16x128xbf16>
    %81 = vector.shape_cast %80 : vector<1x16x128xbf16> to vector<16x128xbf16>
    %82 = vector.shape_cast %79 : vector<16x128xbf16> to vector<1x16x128xbf16>
    tpu.vector_store %arg13[%c0_34, %c0_35, %c0_36], %82 {strides = array<i32>} : memref<1x16x128xbf16, #tpu.memory_space<vmem>>, vector<1x16x128xbf16>,
    %83 = vector.extract_strided_slice %58 {offsets = [0, 256], sizes = [16, 128], strides = [1, 1]} : vector<16x640xf32> to vector<16x128xf32>
    %c0_37 = arith.constant 0 : index
    %c0_38 = arith.constant 0 : index
    %c0_39 = arith.constant 0 : index
    %84 = vector.load %arg4[%c0_37, %c0_38, %c0_39] : memref<1x16x128xbf16, #tpu.memory_space<vmem>>, vector<1x16x128xbf16>
    %85 = vector.shape_cast %84 : vector<1x16x128xbf16> to vector<16x128xbf16>
    %86 = arith.extf %85 : vector<16x128xbf16> to vector<16x128xf32>
    %87 = vector.broadcast %60 : vector<16x1xf32> to vector<16x128xf32>
    %88 = arith.mulf %87, %86 : vector<16x128xf32>
    %89 = arith.addf %83, %88 : vector<16x128xf32>
    %90 = arith.truncf %89 : vector<16x128xf32> to vector<16x128xbf16>
    %c0_40 = arith.constant 0 : index
    %c0_41 = arith.constant 0 : index
    %c0_42 = arith.constant 0 : index
    %91 = vector.load %arg14[%c0_40, %c0_41, %c0_42] : memref<1x16x128xbf16, #tpu.memory_space<vmem>>, vector<1x16x128xbf16>
    %92 = vector.shape_cast %91 : vector<1x16x128xbf16> to vector<16x128xbf16>
    %93 = vector.shape_cast %90 : vector<16x128xbf16> to vector<1x16x128xbf16>
    tpu.vector_store %arg14[%c0_40, %c0_41, %c0_42], %93 {strides = array<i32>} : memref<1x16x128xbf16, #tpu.memory_space<vmem>>, vector<1x16x128xbf16>,
    %94 = vector.extract_strided_slice %58 {offsets = [0, 384], sizes = [16, 128], strides = [1, 1]} : vector<16x640xf32> to vector<16x128xf32>
    %c0_43 = arith.constant 0 : index
    %c0_44 = arith.constant 0 : index
    %c0_45 = arith.constant 0 : index
    %95 = vector.load %arg5[%c0_43, %c0_44, %c0_45] : memref<1x16x128xbf16, #tpu.memory_space<vmem>>, vector<1x16x128xbf16>
    %96 = vector.shape_cast %95 : vector<1x16x128xbf16> to vector<16x128xbf16>
    %97 = arith.extf %96 : vector<16x128xbf16> to vector<16x128xf32>
    %98 = vector.broadcast %60 : vector<16x1xf32> to vector<16x128xf32>
    %99 = arith.mulf %98, %97 : vector<16x128xf32>
    %100 = arith.addf %94, %99 : vector<16x128xf32>
    %101 = arith.truncf %100 : vector<16x128xf32> to vector<16x128xbf16>
    %c0_46 = arith.constant 0 : index
    %c0_47 = arith.constant 0 : index
    %c0_48 = arith.constant 0 : index
    %102 = vector.load %arg15[%c0_46, %c0_47, %c0_48] : memref<1x16x128xbf16, #tpu.memory_space<vmem>>, vector<1x16x128xbf16>
    %103 = vector.shape_cast %102 : vector<1x16x128xbf16> to vector<16x128xbf16>
    %104 = vector.shape_cast %101 : vector<16x128xbf16> to vector<1x16x128xbf16>
    tpu.vector_store %arg15[%c0_46, %c0_47, %c0_48], %104 {strides = array<i32>} : memref<1x16x128xbf16, #tpu.memory_space<vmem>>, vector<1x16x128xbf16>,
    %105 = vector.extract_strided_slice %58 {offsets = [0, 512], sizes = [16, 128], strides = [1, 1]} : vector<16x640xf32> to vector<16x128xf32>
    %c0_49 = arith.constant 0 : index
    %c0_50 = arith.constant 0 : index
    %c0_51 = arith.constant 0 : index
    %106 = vector.load %arg6[%c0_49, %c0_50, %c0_51] : memref<1x16x128xbf16, #tpu.memory_space<vmem>>, vector<1x16x128xbf16>
    %107 = vector.shape_cast %106 : vector<1x16x128xbf16> to vector<16x128xbf16>
    %108 = arith.extf %107 : vector<16x128xbf16> to vector<16x128xf32>
    %109 = vector.broadcast %60 : vector<16x1xf32> to vector<16x128xf32>
    %110 = arith.mulf %109, %108 : vector<16x128xf32>
    %111 = arith.addf %105, %110 : vector<16x128xf32>
    %112 = arith.truncf %111 : vector<16x128xf32> to vector<16x128xbf16>
    %c0_52 = arith.constant 0 : index
    %c0_53 = arith.constant 0 : index
    %c0_54 = arith.constant 0 : index
    %113 = vector.load %arg16[%c0_52, %c0_53, %c0_54] : memref<1x16x128xbf16, #tpu.memory_space<vmem>>, vector<1x16x128xbf16>
    %114 = vector.shape_cast %113 : vector<1x16x128xbf16> to vector<16x128xbf16>
    %115 = vector.shape_cast %112 : vector<16x128xbf16> to vector<1x16x128xbf16>
    tpu.vector_store %arg16[%c0_52, %c0_53, %c0_54], %115 {strides = array<i32>} : memref<1x16x128xbf16, #tpu.memory_space<vmem>>, vector<1x16x128xbf16>,
    return
  }
  func.func @transform_0(%arg0: i32, %arg1: i32) -> (i32, i32, i32) {
    %c0_i32 = arith.constant 0 : i32
    %c0_i32_0 = arith.constant 0 : i32
    return %arg0, %arg1, %c0_i32 : i32, i32, i32
  }
  func.func @transform_1(%arg0: i32, %arg1: i32) -> (i32, i32, i32) {
    %c0_i32 = arith.constant 0 : i32
    %c0_i32_0 = arith.constant 0 : i32
    return %arg0, %arg1, %c0_i32 : i32, i32, i32
  }
  func.func @transform_2(%arg0: i32, %arg1: i32) -> (i32, i32, i32) {
    %c0_i32 = arith.constant 0 : i32
    %c0_i32_0 = arith.constant 0 : i32
    return %arg0, %arg1, %c0_i32 : i32, i32, i32
  }
  func.func @transform_3(%arg0: i32, %arg1: i32) -> (i32, i32, i32) {
    %c0_i32 = arith.constant 0 : i32
    %c0_i32_0 = arith.constant 0 : i32
    return %arg0, %arg1, %c0_i32 : i32, i32, i32
  }
  func.func @transform_4(%arg0: i32, %arg1: i32) -> (i32, i32, i32) {
    %c0_i32 = arith.constant 0 : i32
    %c0_i32_0 = arith.constant 0 : i32
    return %arg0, %arg1, %c0_i32 : i32, i32, i32
  }
  func.func @transform_5(%arg0: i32, %arg1: i32) -> (i32, i32, i32) {
    %c0_i32 = arith.constant 0 : i32
    %c0_i32_0 = arith.constant 0 : i32
    %c0_i32_1 = arith.constant 0 : i32
    return %arg0, %c0_i32, %c0_i32_0 : i32, i32, i32
  }
  func.func @transform_6(%arg0: i32, %arg1: i32) -> (i32, i32, i32) {
    %c0_i32 = arith.constant 0 : i32
    %c0_i32_0 = arith.constant 0 : i32
    %c0_i32_1 = arith.constant 0 : i32
    return %arg0, %c0_i32, %c0_i32_0 : i32, i32, i32
  }
  func.func @transform_7(%arg0: i32, %arg1: i32) -> (i32, i32, i32) {
    %c0_i32 = arith.constant 0 : i32
    %c0_i32_0 = arith.constant 0 : i32
    return %arg0, %arg1, %c0_i32 : i32, i32, i32
  }
  func.func @transform_8(%arg0: i32, %arg1: i32) -> (i32, i32, i32) {
    %c0_i32 = arith.constant 0 : i32
    %c0_i32_0 = arith.constant 0 : i32
    %c0_i32_1 = arith.constant 0 : i32
    return %arg0, %c0_i32, %c0_i32_0 : i32, i32, i32
  }
  func.func @transform_9(%arg0: i32, %arg1: i32) -> (i32, i32, i32) {
    %c0_i32 = arith.constant 0 : i32
    %c0_i32_0 = arith.constant 0 : i32
    return %arg0, %arg1, %c0_i32 : i32, i32, i32
  }
  func.func @transform_10(%arg0: i32, %arg1: i32) -> (i32, i32, i32) {
    %c0_i32 = arith.constant 0 : i32
    %c0_i32_0 = arith.constant 0 : i32
    return %arg0, %arg1, %c0_i32 : i32, i32, i32
  }
  func.func @transform_11(%arg0: i32, %arg1: i32) -> (i32, i32, i32) {
    %c0_i32 = arith.constant 0 : i32
    %c0_i32_0 = arith.constant 0 : i32
    return %arg0, %arg1, %c0_i32 : i32, i32, i32
  }
  func.func @transform_12(%arg0: i32, %arg1: i32) -> (i32, i32, i32) {
    %c0_i32 = arith.constant 0 : i32
    %c0_i32_0 = arith.constant 0 : i32
    return %arg0, %arg1, %c0_i32 : i32, i32, i32
  }
  func.func @transform_13(%arg0: i32, %arg1: i32) -> (i32, i32, i32) {
    %c0_i32 = arith.constant 0 : i32
    %c0_i32_0 = arith.constant 0 : i32
    return %arg0, %arg1, %c0_i32 : i32, i32, i32
  }
  func.func @transform_14(%arg0: i32, %arg1: i32) -> (i32, i32, i32) {
    %c0_i32 = arith.constant 0 : i32
    %c0_i32_0 = arith.constant 0 : i32
    return %arg0, %arg1, %c0_i32 : i32, i32, i32
  }
}

</mosaic_0001>

<bundles_post_ra>
// kernel: tpu_custom_call.1
= control target key start
LH: loop header
LB: loop body
LE: loop exit
PB: predicated region body
PF: predicated region fallthrough
CT: control target
= control target key end

     0   :  { %s3629_s0 = inlined_call_operand.vmem [shape: bf16[2,16,128], index: 0, kind: input, shape index: {}]   ;;  %s3630_s1 = inlined_call_operand.vmem [shape: bf16[2,16,128], index: 1, kind: input, shape index: {}]   ;;  %s3631_s2 = inlined_call_operand.hbm [shape: bf16[2,16,128], index: 2, kind: input, shape index: {}]   ;;  %s3632_s3 = inlined_call_operand.hbm [shape: bf16[2,16,128], index: 3, kind: input, shape index: {}]   ;;  %s3633_s4 = inlined_call_operand.vmem [shape: bf16[2,16,128], index: 4, kind: input, shape index: {}]   ;;  %s3634_s5 = inlined_call_operand.hbm [shape: bf16[2,128,128], index: 5, kind: input, shape index: {}]   ;;  %s3635_s6 = inlined_call_operand.hbm [shape: bf16[2,128,640], index: 6, kind: input, shape index: {}]   ;;  %s3636_s7 = inlined_call_operand.vmem [shape: f32[2,16,1], index: 7, kind: input, shape index: {}]   ;;  %s3637_s8 = inlined_call_operand.vmem [shape: f32[2,1,128], index: 8, kind: input, shape index: {}]   ;;  %s3638_s9 = inlined_call_operand.vmem [shape: f32[2,16,1], index: 9, kind: output, shape index: {0}]   ;;  %s3639_s10 = inlined_call_operand.hbm [shape: bf16[2,16,128], index: 10, kind: output, shape index: {1}]   ;;  %s3640_s11 = inlined_call_operand.hbm [shape: bf16[2,16,128], index: 11, kind: output, shape index: {2}]   ;;  %s3641_s12 = inlined_call_operand.hbm [shape: bf16[2,16,128], index: 12, kind: output, shape index: {3}]   ;;  %s3642_s13 = inlined_call_operand.hbm [shape: bf16[2,16,128], index: 13, kind: output, shape index: {4}]   ;;  %s3643_s14 = inlined_call_operand.hbm [shape: bf16[2,16,128], index: 14, kind: output, shape index: {5}]  }
   0x1   :  { %3666 = sst [smem:[#allocation29_spill]] %s3629_s0 }
   0x2   :  { %3667 = sst [smem:[#allocation30_spill]] %s3630_s1 }
   0x3   :  { %3668 = sst [smem:[#allocation31_spill]] %s3631_s2 }
   0x4   :  { %3669 = sst [smem:[#allocation32_spill]] %s3632_s3 }
   0x5   :  { %3670 = sst [smem:[#allocation33_spill]] %s3633_s4 }
   0x6   :  { %3671 = sst [smem:[#allocation34_spill]] %s3634_s5 }
   0x7   :  { %3672 = sst [smem:[#allocation35_spill]] %s3635_s6 }
   0x8   :  { %3673 = sst [smem:[#allocation36_spill]] %s3636_s7 }
   0x9   :  { %3674 = sst [smem:[#allocation37_spill]] %s3637_s8 }
   0xa   :  { %3675 = sst [smem:[#allocation38_spill]] %s3638_s9 }
   0xb   :  { %3676 = sst [smem:[#allocation39_spill]] %s3639_s10 }
   0xc   :  { %3677 = sst [smem:[#allocation40_spill]] %s3640_s11 }
   0xd   :  { %3678 = sst [smem:[#allocation41_spill]] %s3641_s12 }
   0xe   :  { %3679 = sst [smem:[#allocation42_spill]] %s3642_s13 }
   0xf   :  { %3680 = sst [smem:[#allocation43_spill]] %s3643_s14 }
  0x10   :  { %20 = vsyncpa [#allocation3], 0 }
  0x11   :  { %22 = vsyncpa [#allocation3 + $0x1], 0 }
  0x12   :  { %23 = vsyncpa [#allocation6], 0 }
  0x13   :  { %25 = vsyncpa [#allocation6 + $0x1], 0 }
  0x14   :  { %26 = vsyncpa [#allocation9], 0 }
  0x15   :  { %28 = vsyncpa [#allocation9 + $0x1], 0 }
  0x16   :  { %29 = vsyncpa [#allocation4], 0 }
  0x17   :  { %31 = vsyncpa [#allocation4 + $0x1], 0 }
  0x18   :  { %32 = vsyncpa [#allocation12], 0 }
  0x19   :  { %34 = vsyncpa [#allocation12 + $0x1], 0 }
  0x1a   :  { %35 = vsyncpa [#allocation15], 0 }
  0x1b   :  { %37 = vsyncpa [#allocation15 + $0x1], 0  ;;  %s2953_s29 = smov 0   ;;  %s2955_s30 = smov 0  }
  0x1c   :  { %s2957_s15 = smov 0   ;;  %s2959_s16 = smov 0  }
  0x1d   :  { %s2961_s17 = smov 0   ;;  %s2963_s18 = smov 0  }
  0x1e LB: > { %3681 = sst [smem:[#allocation23_spill]] %s2838_s29  ;;  %s2984_s19 = sadd.s32 4294967295, %s2858_s18   ;;  %s2858_s18 = sphi %s2963_s18, %s43_s18   ;;  %s2854_s17 = sphi %s2961_s17, %s3736_s17   ;;  %s2850_s16 = sphi %s2959_s16, %s3735_s16   ;;  %s2846_s15 = sphi %s2957_s15, %s3731_s15   ;;  %s2842_s30 = sphi %s2955_s30, %s3734_s30   ;;  %s2838_s29 = sphi %s2953_s29, %s3733_s29  }
  0x1f   : > { %3682 = sst [smem:[#allocation24_spill]] %s2846_s15  ;;  %s3647_s20 = sadd.s32 4294967294, %s2858_s18  }
  0x20   : > { %3683 = sst [smem:[#allocation25_spill]] %s2858_s18  ;;  %s55_s21 = sadd.s32 1, %s2854_s17 }
  0x21   : > { %s120_s22 = sadd.s32 1, %s2846_s15  ;;  %p57_p0 = scmp.ge.s32.totalorder %s55_s21, 2 }
  0x22   : > { %p127_p1 = scmp.ne.s32.totalorder %s2846_s15, %s2842_s30  ;;  %p128_p2 = scmp.eq.s32.totalorder %s2858_s18, 0 }
  0x23   : > { %p133_p3 = scmp.ne.s32.totalorder %s2842_s30, %s2838_s29  ;;  %s3738_s21 = smov (%p57_p0, %s55_s21), 0 }
  0x24   : > { %3684 = sst [smem:[#allocation26_spill]] %s3738_s21  ;;  %p2996_p4 = por %p128_p2, %p127_p1 }
  0x25   : > { %p134_p5 = scmp.eq.s32.totalorder %s2984_s19, 0  ;;  %s115_s24 = ssub.s32 %s2854_s17, %s3738_s21 }
  0x26   : > { %p349_p6 = scmp.eq.s32.totalorder %s2984_s19, 1  ;;  %p118_p7 = scmp.eq.s32.totalorder %s115_s24, 0 }
  0x27   : > { %p3004_p8 = por %p134_p5, %p133_p3  ;;  %p355_p10 = scmp.eq.s32.totalorder %s3647_s20, 1 }
  0x28   : > { %p3008_p9 = por %p349_p6, %p127_p1  ;;  %p2382_p13 = scmp.lt.s32.totalorder %s2858_s18, 2 }
  0x29   : > { %s3686_s25 = scalar_select %p3004_p8, 1, 0 }
  0x2a   : > { %s3687_s26 = scalar_select %p3008_p9, 1, 0 }
  0x2b   : > { %s3015_s27 = scalar_select %p118_p7, %s2846_s15, %s120_s22  }
  0x2c   : > { %p3017_p11 = por %p355_p10, %p133_p3  ;;  %s3024_s24 = sand.u32 1, %s2846_s15  }
  0x2d   : > { %3688 = sst [smem:[#allocation27_spill]] %s3015_s27  ;;  %s3651_s21 = sshll.u32 %s3024_s24, 3 }
  0x2e   : > { %s3689_s28 = scalar_select %p3017_p11, 1, 0 }
  0x2f   : > { %s3652_s29 = sshll.u32 %s2854_s17, 7  ;;  %p3030_p0 = pnand %p2382_p13, %p2996_p4 }
  0x30   : > { %3690 = sst [smem:[#allocation28_spill]] %s3689_s28  ;;  %s536_s22 = sand.u32 1, %s2858_s18  }
  0x31   : > { %s3692_s3 = sld [smem:[#allocation32_spill]]  ;;  %s540_s15 = scalar_lea.vmem [#allocation5], %s3651_s21 }
  0x32   : > { %s549_s4 = sshll.u32 %s540_s15, 4  ;;  %s3048_s23 = scalar_lea.sflag [#allocation6], %s536_s22  ;;  %s3045_s4 = int_to_ptr.vmem [resolvable:$true] %s549_s4 }
  0x33   : > { %p3054_p4 = pneg %p3030_p0 }
  0x37   : > { %s3040_s28 = scalar_lea.hbm %s3692_s3, %s3652_s29  ;;  %s2533_s15 = scalar_lea.hbm %s3692_s3, 256 }
  0x38   : > { %s2528_s12 = scalar_lea.hbm %s3040_s28, 128  ;;  %p2534_p7 = scmp.lt.u32.totalorder %s3040_s28, %s3692_s3 }
  0x39   : > { %p2529_p3 = scmp.ne.s32.totalorder %s3040_s28, %s2528_s12  ;;  %p2535_p10 = scmp.lt.u32.totalorder %s2533_s15, %s2528_s12 }
  0x3a   : > { %p2537_p12 = scmp.lt.u32.totalorder %s2528_s12, %s3040_s28 }
  0x3b   : > { %p2531_p5 = pnand %p3054_p4, %p2529_p3  ;;  %p2536_p13 = por %p2535_p10, %p2534_p7 }
  0x3d   : > { %p2532_p6 = pneg %p2531_p5  ;;  %p2538_p1 = por %p2537_p12, %p2536_p13 }
  0x3f   : > { %p2539_p2 = pnand %p2538_p1, %p2532_p6 }
  0x41   : > { %2542 = shalt.err (!%p2539_p2)
}
  0x42   : > { %s2543_s22 = scalar_lea.vmem %s3045_s4, 128  ;;  %s2860_s21 = smov [#allocation5]  }
  0x43   : > { %p2544_p3 = scmp.ne.s32.totalorder %s3045_s4, %s2543_s22  ;;  %s2548_s27 = sshll.u32 %s2860_s21, 4  ;;  %s2549_s27 = int_to_ptr.vmem [resolvable:$false] %s2548_s27 }
  0x44   : > { %s2550_s13 = scalar_lea.vmem %s2549_s27, 256  ;;  %p2551_p9 = scmp.lt.s32.totalorder %s3045_s4, %s2549_s27 }
  0x45   : > { %p2546_p5 = pnand %p2544_p3, %p3054_p4  ;;  %p2552_p8 = scmp.lt.s32.totalorder %s2550_s13, %s2543_s22 }
  0x47   : > { %p2547_p11 = pneg %p2546_p5  ;;  %p2553_p7 = por %p2552_p8, %p2551_p9 }
  0x49   : > { %p2554_p10 = pnand %p2553_p7, %p2547_p11 }
  0x4b   : > { %2557 = shalt.err (!%p2554_p10)
}
  0x4c   : > { %s3658_s12 = smov 64   ;;  %s3660_s29 = smov 4  }
  0x4d   : > { %2359 = dma.hbm_to_vmem [thread:$0]  (!%p3030_p0), %s3040_s28, 128, %s3045_s4, %s3048_s23, %s3658_s12, %s3658_s12, %s3660_s29  }
  0x4e   : > { %p3694_p8 = scmp.lt.s32.totalorder %s2858_s18, 3  ;;  %p3695_p9 = scmp.ge.s32.totalorder %s2858_s18, 1 }
  0x4f   : > { %s3697_s22 = sshll.u32 %s2854_s17, 7  ;;  %s3698_s2 = sld [smem:[#allocation31_spill]] }
  0x50   : > { %p3085_p11 = pnand %p3695_p9, %p3694_p8  ;;  %s3699_s3 = sshll.u32 %s3024_s24, 3 }
  0x51   : > { %s517_s11 = scalar_lea.vmem [#allocation2], %s3699_s3  ;;  %s2096_s4 = sshll.u32 %s3024_s24, 6 }
  0x52   : > { %s3696_s15 = scalar_select %p3085_p11, 1, 0 }
  0x53   : > { %s526_s10 = sshll.u32 %s517_s11, 4  ;;  %s514_s28 = scalar_lea.sflag [#allocation3], %s3024_s24  ;;  %s3099_s10 = int_to_ptr.vmem [resolvable:$true] %s526_s10 }
  0x55   : > { %s3094_s13 = scalar_lea.hbm %s3698_s2, %s3697_s22  ;;  %s2563_s22 = scalar_lea.hbm %s3698_s2, 256 }
  0x56   : > { %s2558_s12 = scalar_lea.hbm %s3094_s13, 128  ;;  %p2564_p6 = scmp.lt.u32.totalorder %s3094_s13, %s3698_s2 }
  0x57   : > { %p2559_p12 = scmp.ne.s32.totalorder %s3094_s13, %s2558_s12  ;;  %p2565_p13 = scmp.lt.u32.totalorder %s2563_s22, %s2558_s12 }
  0x58   : > { %p2567_p5 = scmp.lt.u32.totalorder %s2558_s12, %s3094_s13 }
  0x59   : > { %p2561_p1 = pnand %p2559_p12, %p3054_p4  ;;  %p2566_p3 = por %p2565_p13, %p2564_p6 }
  0x5b   : > { %p2562_p2 = pneg %p2561_p1  ;;  %p2568_p7 = por %p2567_p5, %p2566_p3 }
  0x5d   : > { %p2569_p10 = pnand %p2568_p7, %p2562_p2 }
  0x5f   : > { %2572 = shalt.err (!%p2569_p10)
}
  0x60   : > { %s2573_s3 = scalar_lea.vmem %s3099_s10, 128  ;;  %s2863_s11 = smov [#allocation2]  }
  0x61   : > { %p2574_p8 = scmp.ne.s32.totalorder %s3099_s10, %s2573_s3  ;;  %s2578_s29 = sshll.u32 %s2863_s11, 4  ;;  %s2579_s29 = int_to_ptr.vmem [resolvable:$false] %s2578_s29 }
  0x62   : > { %s2580_s18 = scalar_lea.vmem %s2579_s29, 256  ;;  %p2581_p1 = scmp.lt.s32.totalorder %s3099_s10, %s2579_s29 }
  0x63   : > { %p2576_p9 = pnand %p2574_p8, %p3054_p4  ;;  %p2582_p11 = scmp.lt.s32.totalorder %s2580_s18, %s2573_s3 }
  0x65   : > { %p2577_p12 = pneg %p2576_p9  ;;  %p2583_p6 = por %p2582_p11, %p2581_p1 }
  0x67   : > { %p2584_p13 = pnand %p2583_p6, %p2577_p12 }
  0x69   : > { %2587 = shalt.err (!%p2584_p13)
}
  0x6a   : > { %s3700_s12 = smov 4   ;;  %s3701_s21 = smov 64  }
  0x6b   : > { %2356 = dma.hbm_to_vmem [thread:$0]  (!%p3030_p0), %s3094_s13, 128, %s3099_s10, %s514_s28, %s3701_s21, %s3701_s21, %s3700_s12  }
  0x6c   : > { %s2208_s22 = sshll.u32 %s2854_s17, 10  ;;  %s576_s27 = scalar_lea.vmem [#allocation7], %s2096_s4 }
  0x6d   : > { %s583_s3 = sshll.u32 %s576_s27, 4  ;;  %s3702_s5 = sld [smem:[#allocation34_spill]]  ;;  %s3136_s3 = int_to_ptr.vmem [resolvable:$true] %s583_s3 }
  0x73   : > { %s3134_s18 = scalar_lea.hbm %s3702_s5, %s2208_s22  ;;  %s2593_s4 = scalar_lea.hbm %s3702_s5, 2048 }
  0x74   : > { %s2588_s2 = scalar_lea.hbm %s3134_s18, 1024  ;;  %p2594_p5 = scmp.lt.u32.totalorder %s3134_s18, %s3702_s5 }
  0x75   : > { %p2589_p11 = scmp.ne.s32.totalorder %s3134_s18, %s2588_s2  ;;  %p2595_p7 = scmp.lt.u32.totalorder %s2593_s4, %s2588_s2 }
  0x76   : > { %p2597_p8 = scmp.lt.u32.totalorder %s2588_s2, %s3134_s18 }
  0x77   : > { %p2591_p2 = pnand %p2589_p11, %p3054_p4  ;;  %p2596_p10 = por %p2595_p7, %p2594_p5 }
  0x79   : > { %p2592_p3 = pneg %p2591_p2  ;;  %p2598_p9 = por %p2597_p8, %p2596_p10 }
  0x7b   : > { %p2599_p12 = pnand %p2598_p9, %p2592_p3 }
  0x7d   : > { %2602 = shalt.err (!%p2599_p12)
}
  0x7e   : > { %s2603_s22 = scalar_lea.vmem %s3136_s3, 1024  ;;  %s2864_s11 = smov [#allocation7]  }
  0x7f   : > { %p2604_p1 = scmp.ne.s32.totalorder %s3136_s3, %s2603_s22  ;;  %s2608_s29 = sshll.u32 %s2864_s11, 4  ;;  %s2609_s29 = int_to_ptr.vmem [resolvable:$false] %s2608_s29 }
  0x80   : > { %s2610_s10 = scalar_lea.vmem %s2609_s29, 2048  ;;  %p2611_p11 = scmp.lt.s32.totalorder %s3136_s3, %s2609_s29 }
  0x81   : > { %p2606_p6 = pnand %p2604_p1, %p3054_p4  ;;  %p2612_p2 = scmp.lt.s32.totalorder %s2610_s10, %s2603_s22 }
  0x83   : > { %p2607_p13 = pneg %p2606_p6  ;;  %p2613_p5 = por %p2612_p2, %p2611_p11 }
  0x85   : > { %p2614_p7 = pnand %p2613_p5, %p2607_p13 }
  0x87   : > { %2617 = shalt.err (!%p2614_p7)
}
  0x88   : > { %2362 = dma.hbm_to_vmem [thread:$0]  (!%p3030_p0), %s3134_s18, 1024, %s3136_s3, %s3048_s23, %s3701_s21, %s3701_s21, %s3700_s12  }
  0x89   : > { %s2332_s2 = smul.u32 320, %s3024_s24  ;;  %s3703_s6 = sld [smem:[#allocation35_spill]] }
  0x8a   : > { %s2333_s13 = smul.u32 5120, %s2854_s17  ;;  %s594_s29 = scalar_lea.sflag [#allocation9], %s3024_s24 }
  0x8b   : > { %s597_s22 = scalar_lea.vmem [#allocation8], %s2332_s2 }
  0x8c   : > { %s604_s11 = sshll.u32 %s597_s22, 4  ;;  %s3170_s11 = int_to_ptr.vmem [resolvable:$true] %s604_s11 }
  0x8f   : > { %s3168_s27 = scalar_lea.hbm %s3703_s6, %s2333_s13  ;;  %s2623_s21 = scalar_lea.hbm %s3703_s6, 10240 }
  0x90   : > { %s2618_s10 = scalar_lea.hbm %s3168_s27, 5120  ;;  %p2624_p9 = scmp.lt.u32.totalorder %s3168_s27, %s3703_s6 }
  0x91   : > { %p2619_p3 = scmp.ne.s32.totalorder %s3168_s27, %s2618_s10  ;;  %p2625_p12 = scmp.lt.u32.totalorder %s2623_s21, %s2618_s10 }
  0x92   : > { %p2627_p6 = scmp.lt.u32.totalorder %s2618_s10, %s3168_s27 }
  0x93   : > { %p2621_p10 = pnand %p2619_p3, %p3054_p4  ;;  %p2626_p1 = por %p2625_p12, %p2624_p9 }
  0x95   : > { %p2622_p8 = pneg %p2621_p10  ;;  %p2628_p13 = por %p2627_p6, %p2626_p1 }
  0x97   : > { %p2629_p11 = pnand %p2628_p13, %p2622_p8 }
  0x99   : > { %2632 = shalt.err (!%p2629_p11)
}
  0x9a   : > { %s2633_s2 = scalar_lea.vmem %s3170_s11, 5120  ;;  %s2865_s13 = smov [#allocation8]  }
  0x9b   : > { %p2634_p2 = scmp.ne.s32.totalorder %s3170_s11, %s2633_s2  ;;  %s2638_s4 = sshll.u32 %s2865_s13, 4  ;;  %s2639_s4 = int_to_ptr.vmem [resolvable:$false] %s2638_s4 }
  0x9c   : > { %s2640_s28 = scalar_lea.vmem %s2639_s4, 10240  ;;  %p2641_p3 = scmp.lt.s32.totalorder %s3170_s11, %s2639_s4 }
  0x9d   : > { %p2636_p5 = pnand %p2634_p2, %p3054_p4  ;;  %p2642_p10 = scmp.lt.s32.totalorder %s2640_s28, %s2633_s2 }
  0x9f   : > { %p2637_p7 = pneg %p2636_p5  ;;  %p2643_p9 = por %p2642_p10, %p2641_p3 }
  0xa1   : > { %p2644_p12 = pnand %p2643_p9, %p2637_p7 }
  0xa3   : > { %2647 = shalt.err (!%p2644_p12)
}
  0xa4   : > { %s2866_s22 = smov 320   ;;  %s2867_s10 = smov 20  }
  0xa5   : > { %2365 = dma.hbm_to_vmem [thread:$0]  (!%p3030_p0), %s3168_s27, 5120, %s3170_s11, %s594_s29, %s2866_s22, %s2866_s22, %s2867_s10  }
  0xa6   : > { %p3704_p4 = scmp.ne.s32.totalorder %s3696_s15, 0 }
  0xa7   : > { %s3199_s20 = sand.u32 (!%p3704_p4), 1, %s2842_s30   ;;  %p3705_p8 = scmp.ne.s32.totalorder (!%p3704_p4), %s3686_s25, 0 }
  0xa8   : > { %635 = sbr.rel (%p3704_p4) target bundleno = 1357 (0x54d), region = 56  ;;  %s3202_s23 = sshll.u32 (!%p3704_p4), %s3199_s20, 3 }
  0xa9   : > { %s638_s12 = scalar_lea.sflag (!%p3704_p4), [#allocation3], %s3199_s20  ;;  %s641_s21 = scalar_lea.vmem (!%p3704_p4), [#allocation2], %s3202_s23 }
  0xaf   : > { %2813 = dma.done.wait (%p3705_p8), %s638_s12, 128  }
  0xb0   : > { %2815 = vsyncadd (%p3705_p8), %s638_s12, 4294967168  ;;  %s3211_s14 = sand.u32 1, %s2984_s19   ;;  %s650_s15 = scalar_lea.vmem [#allocation5], %s3202_s23 }
  0xb1   : > { %s647_s24 = scalar_lea.sflag [#allocation6], %s3211_s14 }
  0xb2   : > { %2817 = dma.done.wait (%p3705_p8), %s647_s24, 1152  }
  0xb3   : > { %2819 = vsyncadd (%p3705_p8), %s647_s24, 4294966144  ;;  %s2103_s27 = sshll.u32 %s3199_s20, 6  ;;  %s2334_s11 = smul.u32 320, %s3199_s20 }
  0xb4   : > { %s3221_s29 = scalar_lea.vmem [#allocation7], %s2103_s27  ;;  %s665_s3 = scalar_lea.sflag [#allocation9], %s3199_s20 }
  0xb5   : > { %s3224_s18 = scalar_lea.vmem [#allocation8], %s2334_s11 }
  0xb6   : > { %2821 = dma.done.wait (%p3705_p8), %s665_s3, 5120  }
  0xb7   : > { %2823 = vsyncadd (%p3705_p8), %s665_s3, 4294962176  ;;  %p797_p0 = scmp.lt.s32.totalorder %s2850_s16, 1  ;;  %v2868_v0 = vmov 0.0   ;;  %s3706_s0 = sld [smem:[#allocation29_spill]]  ;;  %v2448_v4 = vld [vmem:[%s3221_s29] sm:$0xff]   ;;  %v2449_v6 = vld [vmem:[%s3221_s29 + $0x8] sm:$0xff]   ;;  %v990_v30 = vlaneseq }
  0xb8   : > { %2292 = vmatprep.subr.bf16.mxu0 %v2868_v0  ;;  %v2450_v8 = vld [vmem:[%s3221_s29 + $0x10] sm:$0xff]   ;;  %v2451_v9 = vld [vmem:[%s3221_s29 + $0x18] sm:$0xff]   ;;  %v2452_v10 = vld [vmem:[%s3221_s29 + $0x20] sm:$0xff]   ;;  %vm2869_vm0 = vmmov 0   ;;  %s3707_s8 = sld [smem:[#allocation37_spill]]  ;;  %s3708_s7 = sld [smem:[#allocation36_spill]] }
  0xb9   : > { %s3233_s19 = scalar_select %p797_p0, %s2850_s16, 1  ;;  %2293 = vmatpush3.bf16.msra.mxu0 %v2448_v4  ;;  %v2453_v11 = vld [vmem:[%s3221_s29 + $0x28] sm:$0xff]   ;;  %2308 = vmatprep.mubr.msk.bf16.mxu0 %vm2869_vm0, %v2868_v0  ;;  %v2454_v12 = vld [vmem:[%s3221_s29 + $0x30] sm:$0xff]   ;;  %v2455_v13 = vld [vmem:[%s3221_s29 + $0x38] sm:$0xff]   ;;  %v3279_v33 = vand.u32 127, %v990_v30  ;;  %v2870_v53 = vmov 0  }
  0xba   : > { %2294 = vmatprep.subr.bf16.mxu0 %v2868_v0  ;;  %2447 = vset.pattern.permute.xlu1 %v2870_v53  ;;  %v1048_v57 = vshrl.u32 %v990_v30, 7  ;;  %s3709_s9 = sld [smem:[#allocation38_spill]]  ;;  %vm1458_vm4 = vcmask 7168   ;;  %v2456_v62 = vld [vmem:[%s3224_s18 + $0x4] ss:$20 sps:$4 sm:$0xff]   ;;  %s781_s22 = scalar_lea.vmem [#allocation13], %s3202_s23 }
  0xbb   : > { %s3236_s2 = sshll.u32 %s3233_s19, 3  ;;  %s2212_s12 = sshll.u32 %s3233_s19, 4  ;;  %2441 = vset.pattern.permute.xlu0 %v2870_v53  ;;  %1361 = vmatprep.mubr.bf16.mxu1 %v2870_v53  ;;  %v2458_v63 = vld [vmem:[%s3224_s18] ss:$20 sps:$4 sm:$0xff]   ;;  %v2488_v30 = vld [vmem:[%s3224_s18 + $0xc8] ss:$20 sps:$4 sm:$0xff]  }
  0xbc   : > { %vm1054_vm3 = vcmp.eq.s32.totalorder %v1048_v57, 0  ;;  %v2461_v4 = vld [vmem:[%s3224_s18 + $0xc] ss:$20 sps:$4 sm:$0xff]   ;;  %1329 = vmatprep.subr.bf16.mxu1 %v2456_v62  ;;  %v2504_v57 = vld [vmem:[%s3224_s18 + $0x10] ss:$20 sps:$4 sm:$0xff]   ;;  %s3712_s1 = sld [smem:[#allocation30_spill]] }
  0xbd   : > { %s804_s25 = scalar_lea.vmem %s3706_s0, %s3236_s2  ;;  %2295 = vmatpush3.bf16.msra.mxu0 %v2449_v6  ;;  %v2467_v6 = vld [vmem:[%s3224_s18 + $0x34] ss:$20 sps:$4 sm:$0xff]   ;;  %1330 = vmatpush1.bf16.msra.mxu1 %v2458_v63  ;;  %v2508_v62 = vld [vmem:[%s3224_s18 + $0xb0] ss:$20 sps:$4 sm:$0xff]   ;;  %v2509_v63 = vld [vmem:[%s3224_s18 + $0xd8] ss:$20 sps:$4 sm:$0xff]  }
  0xbe   : > { %v2230_v1 = vld [vmem:[%s804_s25] sm:$0xff]   ;;  %2296 = vmatprep.subr.bf16.mxu0 %v2868_v0  ;;  %s840_s10 = scalar_lea.vmem %s3707_s8, %s3233_s19  ;;  %s836_s11 = scalar_lea.vmem %s3708_s7, %s2212_s12 }
  0xbf   : > { %v3242_v2 = vunpack.c.l.bf16 %v2230_v1  ;;  %v3244_v3 = vunpack.c.h.bf16 %v2230_v1  ;;  %v2119_v23 = vld [vmem:[%s840_s10] ss:$0 sm:$0xff]  ;;  %v1025_v34 = vld [vmem:[%s836_s11 + $0x8] sm:$0xff]  ;;  %s1642_s10 = sshll.u32 %s781_s22, 4  ;;  %s3420_s27 = sshll.u32 %s2850_s16, 7  ;;  %s3411_s10 = int_to_ptr.vmem [resolvable:$true] %s1642_s10 }
  0xc0   : > { %v1024_v31 = vld [vmem:[%s836_s11] sm:$0xff]  ;;  %v1027_v37 = vadd.f32 0.5, %v1025_v34  ;;  %s849_s13 = scalar_lea.vmem %s3709_s9, %s2212_s12  ;;  %v2459_v1 = vld [vmem:[%s3224_s18 + $0x8] ss:$20 sps:$4 sm:$0xff]   ;;  %s3713_s29 = sld [smem:[#allocation39_spill]] }
  0xc1   : > { %v861_v5 = vmul.f32 %v3242_v2, %v3242_v2  ;;  %v862_v7 = vmul.f32 %v3244_v3, %v3244_v3  ;;  %2297 = vmatpush3.bf16.msra.mxu0 %v2450_v8  ;;  %v1026_v32 = vadd.f32 0.5, %v1024_v31  ;;  %v2465_v8 = vld [vmem:[%s3224_s18 + $0x30] ss:$20 sps:$4 sm:$0xff]   ;;  %v2491_v31 = vld [vmem:[%s3224_s18 + $0xd4] ss:$20 sps:$4 sm:$0xff]   ;;  %s3719_s8 = scalar_lea.vmem [#allocation11], %s3202_s23 }
  0xc2   : > { %2298 = vmatprep.subr.bf16.mxu0 %v2868_v0  ;;  %v2492_v34 = vld [vmem:[%s3224_s18 + $0xf4] ss:$20 sps:$4 sm:$0xff]   ;;  %s814_s25 = scalar_lea.vmem %s3712_s1, %s3236_s2  ;;  %s3716_s1 = sld [smem:[#allocation42_spill]] }
  0xc3   : > { %863 = vadd.xlane.f32.xlu0 %v861_v5  ;;  %v2462_v5 = vld [vmem:[%s3224_s18 + $0x2c] ss:$20 sps:$4 sm:$0xff]   ;;  %s3720_s19 = scalar_lea.vmem [#allocation14], %s3202_s23  ;;  %s1567_s4 = scalar_lea.sflag [#allocation4], %s3199_s20 }
  0xc4   : > { %1331 = vmatprep.subr.bf16.mxu1 %v2462_v5  ;;  %p3721_p6 = scmp.ne.s32.totalorder %s3687_s26, 0 }
  0xc5   : > { %2299 = vmatpush3.bf16.msra.mxu0 %v2451_v9  ;;  %v2468_v9 = vld [vmem:[%s3224_s18 + $0x54] ss:$20 sps:$4 sm:$0xff]  }
  0xc6   : > { %2300 = vmatprep.subr.bf16.mxu0 %v2868_v0  ;;  %s3714_s3 = smov %s3713_s29 }
  0xc7   : > { %865 = vadd.xlane.f32.xlu0 %v862_v7  ;;  %v2464_v7 = vld [vmem:[%s3224_s18 + $0x28] ss:$20 sps:$4 sm:$0xff]  }
  0xc8   : > { %1332 = vmatpush1.bf16.msra.mxu1 %v2464_v7  ;;  %v2239_v7 = vld [vmem:[%s814_s25] sm:$0xff]   ;;  %s3715_s25 = sld [smem:[#allocation40_spill]]  ;;  %s3444_s5 = scalar_lea.hbm %s3716_s1, %s3420_s27 }
  0xc9   : > { %2301 = vmatpush3.bf16.msra.mxu0 %v2452_v10  ;;  %v2473_v10 = vld [vmem:[%s3224_s18 + $0x5c] ss:$20 sps:$4 sm:$0xff]   ;;  %1333 = vmatprep.subr.bf16.mxu1 %v2468_v9 }
  0xca   : > { %2302 = vmatprep.subr.bf16.mxu0 %v2868_v0 }
  0xcd   : > { %2303 = vmatpush3.bf16.msra.mxu0 %v2453_v11  ;;  %v2470_v11 = vld [vmem:[%s3224_s18 + $0x50] ss:$20 sps:$4 sm:$0xff]  }
  0xce   : > { %2304 = vmatprep.subr.bf16.mxu0 %v2868_v0  ;;  %1334 = vmatpush1.bf16.msra.mxu1 %v2470_v11  ;;  %v2240_v11 = vunpack.c.l.bf16 %v2239_v7 }
  0xd1   : > { %2305 = vmatpush3.bf16.msra.mxu0 %v2454_v12  ;;  %v2471_v12 = vld [vmem:[%s3224_s18 + $0x58] ss:$20 sps:$4 sm:$0xff]  }
  0xd2   : > { %2306 = vmatprep.subr.bf16.mxu0 %v2868_v0 }
  0xd5   : > { %2307 = vmatpush3.bf16.msra.mxu0 %v2455_v13  ;;  %v2474_v13 = vld [vmem:[%s3224_s18 + $0x7c] ss:$20 sps:$4 sm:$0xff]  }
  0xd6   : > { %1372 = vmatprep.subr.bf16.mxu0 %v2461_v4  ;;  %1335 = vmatprep.subr.bf16.mxu1 %v2474_v13  ;;  %v2511_v4 = vld [vmem:[%s3224_s18 + $0x128] ss:$20 sps:$4 sm:$0xff]   ;;  %v2241_v13 = vunpack.c.h.bf16 %v2239_v7 }
 0x150   : > { %v864_v14 = vpop.xlane.xlu0 %863 }
 0x151   : > { %v867_v15 = vmax.f32 %v864_v14, 1e-16  ;;  %v2479_v14 = vld [vmem:[%s3224_s18 + $0x84] ss:$20 sps:$4 sm:$0xff]  }
 0x153   : > { %2512 = vrsqrt.f32 %v867_v15  ;;  %v2476_v15 = vld [vmem:[%s3224_s18 + $0x78] ss:$20 sps:$4 sm:$0xff]  }
 0x154   : > { %v866_v16 = vpop.xlane.xlu0 %865  ;;  %1336 = vmatpush1.bf16.msra.mxu1 %v2476_v15 }
 0x155   : > { %v868_v17 = vmax.f32 %v866_v16, 1e-16  ;;  %v2477_v16 = vld [vmem:[%s3224_s18 + $0x80] ss:$20 sps:$4 sm:$0xff]  }
 0x157   : > { %2514 = vrsqrt.f32 %v868_v17  ;;  %v2480_v17 = vld [vmem:[%s3224_s18 + $0xa4] ss:$20 sps:$4 sm:$0xff]  }
 0x158   : > { %1337 = vmatprep.subr.bf16.mxu1 %v2480_v17 }
 0x15d   : > { %v2513_v18 = vpop.eup %2512 }
 0x15e   : > { %v871_v20 = vmul.f32 %v2513_v18, %v3242_v2  ;;  %v2485_v18 = vld [vmem:[%s3224_s18 + $0xac] ss:$20 sps:$4 sm:$0xff]  }
 0x161   : > { %v2515_v19 = vpop.eup %2514 }
 0x162   : > { %v872_v21 = vmul.f32 %v2515_v19, %v3244_v3  ;;  %v2482_v19 = vld [vmem:[%s3224_s18 + $0xa0] ss:$20 sps:$4 sm:$0xff]  }
 0x163   : > { %1338 = vmatpush1.bf16.msra.mxu1 %v2482_v19 }
 0x164   : > { %v873_v22 = vpack.c.bf16 %v872_v21, %v871_v20  ;;  %v2483_v20 = vld [vmem:[%s3224_s18 + $0xa8] ss:$20 sps:$4 sm:$0xff]   ;;  %v2486_v21 = vld [vmem:[%s3224_s18 + $0xcc] ss:$20 sps:$4 sm:$0xff]  }
 0x165   : > { %1339 = vmatprep.subr.bf16.mxu1 %v2486_v21 }
 0x166   : > { %2309 = vmatmul.mubr.bf16.vlgmr.msra.gmra.mrb[0].mxu0 %v873_v22 }
 0x167   : > { %1404 = vmatprep.mubr.bf16.mxu0 %v2870_v53  ;;  %1373 = vmatpush1.bf16.msra.mxu0 %v2459_v1  ;;  %v2510_v1 = vld [vmem:[%s3224_s18 + $0x100] ss:$20 sps:$4 sm:$0xff]  }
 0x168   : > { %1374 = vmatprep.subr.bf16.mxu0 %v2467_v6  ;;  %1340 = vmatpush1.bf16.msra.mxu1 %v2488_v30  ;;  %v2248_v6 = vld [vmem:[%s641_s21] sm:$0xff]   ;;  %s3665_s21 = scalar_lea.vmem [#allocation11], %s3202_s23 }
 0x169   : > { %1341 = vmatprep.subr.bf16.mxu1 %v2492_v34  ;;  %v2250_v9 = vunpack.c.h.bf16 %v2248_v6  ;;  %s1624_s12 = sshll.u32 %s3665_s21, 4  ;;  %s3416_s12 = int_to_ptr.vmem [resolvable:$true] %s1624_s12 }
 0x16b   : > { %1375 = vmatpush1.bf16.msra.mxu0 %v2465_v8  ;;  %v2257_v8 = vld [vmem:[%s650_s15] sm:$0xff]   ;;  %s3664_s15 = scalar_lea.vmem [#allocation14], %s3202_s23 }
 0x16c   : > { %1376 = vmatprep.subr.bf16.mxu0 %v2473_v10  ;;  %s1660_s24 = sshll.u32 %s3664_s15, 4  ;;  %s3434_s15 = scalar_lea.hbm %s3715_s25, %s3420_s27  ;;  %s3422_s24 = int_to_ptr.vmem [resolvable:$true] %s1660_s24 }
 0x16f   : > { %1377 = vmatpush1.bf16.msra.mxu0 %v2471_v12  ;;  %v2258_v12 = vunpack.c.l.bf16 %v2257_v8 }
 0x170   : > { %1378 = vmatprep.subr.bf16.mxu0 %v2479_v14  ;;  %v2259_v14 = vunpack.c.h.bf16 %v2257_v8 }
 0x173   : > { %1379 = vmatpush1.bf16.msra.mxu0 %v2477_v16 }
 0x174   : > { %1380 = vmatprep.subr.bf16.mxu0 %v2485_v18 }
 0x177   : > { %1381 = vmatpush1.bf16.msra.mxu0 %v2483_v20 }
 0x178   : > { %1382 = vmatprep.subr.bf16.mxu0 %v2491_v31 }
 0x239   : > { %v979_v24 = vpop.f32.mrb[0].mxu0 }
 0x23a   : > { %v980_v25 = vadd.f32 %v2119_v23, %v979_v24  ;;  %v2310_v26 = vpop.f32.mrb[1].mxu0 }
 0x23b   : > { %v982_v27 = vpop.f32.mrb[2].mxu0 }
 0x23c   : > { %986 = vmax.xlane.f32.xlu1 %v980_v25  ;;  %v2311_v28 = vpop.f32.mrb[3].mxu0  ;;  %v983_v29 = vadd.f32 %v2119_v23, %v982_v27 }
 0x240   : > { %988 = vmax.xlane.f32.xlu1 %v983_v29 }
 0x2c9   : > { %v987_v35 = vpop.xlane.xlu1 %986 }
 0x2ca   : > { %vm992_vm1 = vcmp.ge.f32.partialorder %v980_v25, %v987_v35  ;;  %v1028_v36 = vsub.f32 %v987_v35, %v1026_v32  ;;  %v2489_v32 = vld [vmem:[%s3224_s18 + $0xd0] ss:$20 sps:$4 sm:$0xff]  }
 0x2cb   : > { %v3282_v38 = vsel %vm992_vm1, %v3279_v33, 128  ;;  %1383 = vmatpush1.bf16.msra.mxu0 %v2489_v32  ;;  %v2494_v35 = vld [vmem:[%s3224_s18 + $0xf0] ss:$20 sps:$4 sm:$0xff]  }
 0x2cc   : > { %2516 = vtanh.f32 %v1028_v36  ;;  %v997_v39 = vshra.s32 %v3282_v38, 16  ;;  %v996_v22 = vand.u32 65535, %v3282_v38  ;;  %v2497_v36 = vld [vmem:[%s3224_s18 + $0xfc] ss:$20 sps:$4 sm:$0xff]   ;;  %1342 = vmatpush1.bf16.msra.mxu1 %v2494_v35 }
 0x2cd   : > { %v989_v40 = vpop.xlane.xlu1 %988  ;;  %1384 = vmatprep.subr.bf16.mxu0 %v2497_v36 }
 0x2ce   : > { %vm993_vm2 = vcmp.ge.f32.partialorder %v983_v29, %v989_v40  ;;  %v1029_v41 = vsub.f32 %v989_v40, %v1027_v37  ;;  %v3285_v42 = vcvt.s32.f32 %v997_v39  ;;  %v998_v24 = vcvt.s32.f32 %v996_v22  ;;  %v2495_v37 = vld [vmem:[%s3224_s18 + $0xf8] ss:$20 sps:$4 sm:$0xff]   ;;  %v2498_v39 = vld [vmem:[%s3224_s18 + $0x11c] ss:$20 sps:$4 sm:$0xff]  }
 0x2cf   : > { %v3288_v43 = vsel %vm993_vm2, %v3279_v33, 128  ;;  %1385 = vmatpush1.bf16.msra.mxu0 %v2495_v37  ;;  %v2500_v40 = vld [vmem:[%s3224_s18 + $0x118] ss:$20 sps:$4 sm:$0xff]   ;;  %1343 = vmatprep.subr.bf16.mxu1 %v2498_v39 }
 0x2d0   : > { %2518 = vtanh.f32 %v1029_v41  ;;  %1000 = vmin.xlane.f32.xlu0 %v3285_v42  ;;  %v1011_v44 = vshra.s32 %v3288_v43, 16  ;;  %v1010_v25 = vand.u32 65535, %v3288_v43  ;;  %v2503_v41 = vld [vmem:[%s3224_s18 + $0x124] ss:$20 sps:$4 sm:$0xff]   ;;  %1344 = vmatpush1.bf16.msra.mxu1 %v2500_v40 }
 0x2d1   : > { %1386 = vmatprep.subr.bf16.mxu0 %v2503_v41  ;;  %2312 = vmatprep.subr.bf16.mxu1 %v2868_v0 }
 0x2d2   : > { %v3292_v45 = vcvt.s32.f32 %v1011_v44  ;;  %v1012_v28 = vcvt.s32.f32 %v1010_v25 }
 0x2d4   : > { %1014 = vmin.xlane.f32.xlu1 %v3292_v45 }
 0x2d6   : > { %v2517_v46 = vpop.eup %2516 }
 0x2d7   : > { %v2128_v47 = vmul.f32 -4.0, %v2517_v46 }
 0x2d9   : > { %v1037_v48 = vmul.f32 1.442695, %v2128_v47 }
 0x2da   : > { %v2519_v49 = vpop.eup %2518 }
 0x2db   : > { %2520 = vpow2.f32 %v1037_v48  ;;  %v2129_v50 = vmul.f32 -4.0, %v2519_v49 }
 0x2dd   : > { %v1039_v51 = vmul.f32 1.442695, %v2129_v50 }
 0x2df   : > { %2522 = vpow2.f32 %v1039_v51 }
 0x2e5   : > { %v2521_v52 = vpop.eup %2520 }
 0x2e6   : > { %v1041_v54 = vadd.f32 1.0, %v2521_v52 }
 0x2e8   : > { %2524 = vrcp.f32 %v1041_v54 }
 0x2e9   : > { %v2523_v55 = vpop.eup %2522 }
 0x2ea   : > { %v1042_v56 = vadd.f32 1.0, %v2523_v55 }
 0x2ec   : > { %2526 = vrcp.f32 %v1042_v56 }
 0x2f2   : > { %v2525_v58 = vpop.eup %2524 }
 0x2f3   : > { %v3300_v59 = vsel %vm1054_vm3, 0.0, %v2525_v58 }
 0x2f4   : > { %1459 = vst.msk [vmem:[%s849_s13] sm:$0xff] %vm1458_vm4, %v3300_v59  ;;  %v1456_v38 = vsub.f32 1.0, %v3300_v59 }
 0x2f6   : > { %v3303_v60 = vpop.eup %2526 }
 0x2f7   : > { %1460 = vst.msk [vmem:[%s849_s13 + $0x8] sm:$0xff] %vm1458_vm4, %v3303_v60  ;;  %v2442_v61 = vpack.i.bf16 %v3303_v60, %v3300_v59  ;;  %v1457_v43 = vsub.f32 1.0, %v3303_v60  ;;  %v2505_v60 = vld [vmem:[%s3224_s18 + $0x38] ss:$20 sps:$4 sm:$0xff]   ;;  %s3428_s13 = scalar_lea.hbm %s3713_s29, %s3420_s27  ;;  %s3717_s29 = sld [smem:[#allocation41_spill]] }
 0x2fd   : > { %s3718_s6 = smov %s3717_s29  ;;  %s3450_s7 = scalar_lea.hbm %s3717_s29, %s3420_s27 }
 0x35d   : > { %v1001_v23 = vpop.xlane.xlu0 %1000 }
 0x35e   : > { %vm1002_vm5 = vcmp.eq.f32.partialorder %v3285_v42, %v1001_v23  ;;  %v2501_v42 = vld [vmem:[%s3224_s18 + $0x120] ss:$20 sps:$4 sm:$0xff]  }
 0x35f   : > { %v1003_v26 = vsel %vm1002_vm5, %v998_v24, inf  ;;  %1387 = vmatpush1.bf16.msra.mxu0 %v2501_v42 }
 0x360   : > { %1004 = vmin.xlane.f32.xlu0 %v1003_v26 }
 0x361   : > { %v1015_v27 = vpop.xlane.xlu1 %1014 }
 0x362   : > { %vm1016_vm6 = vcmp.eq.f32.partialorder %v3292_v45, %v1015_v27  ;;  %v1007_v45 = vcvt.f32.s32 %v1001_v23  ;;  %v1021_v46 = vcvt.f32.s32 %v1015_v27 }
 0x363   : > { %v1017_v29 = vsel %vm1016_vm6, %v1012_v28, inf }
 0x364   : > { %1018 = vmin.xlane.f32.xlu1 %v1017_v29  ;;  %v1008_v49 = vshll.u32 %v1007_v45, 16  ;;  %v1022_v50 = vshll.u32 %v1021_v46, 16 }
 0x375   : > { %1463 = vperm.xlu1 %2447, %v1456_v38  }
 0x376   : > { %2443 = vperm.xlu0 %2441, %v2442_v61   ;;  %v2507_v61 = vld [vmem:[%s3224_s18 + $0x88] ss:$20 sps:$4 sm:$0xff]  }
 0x379   : > { %1468 = vperm.xlu1 %2447, %v1457_v43  }
 0x3ed   : > { %v1005_v44 = vpop.xlane.xlu0 %1004 }
 0x3ee   : > { %v1006_v47 = vcvt.f32.s32 %v1005_v44 }
 0x3f0   : > { %v1009_v52 = vadd.s32 %v1008_v49, %v1006_v47 }
 0x3f1   : > { %v1019_v48 = vpop.xlane.xlu1 %1018 }
 0x3f2   : > { %v1020_v51 = vcvt.f32.s32 %v1019_v48  ;;  %vm1058_vm8 = vcmp.eq.s32.totalorder %v3279_v33, %v1009_v52 }
 0x3f4   : > { %v1023_v53 = vadd.s32 %v1022_v50, %v1020_v51 }
 0x3f5   : > { %v2444_v54 = vpop.permute.xlu0 %2443  ;;  %v3379_v5 = vpop.permute.xlu1 %1463 }
 0x3f6   : > { %v2446_v55 = vunpack.i.h.bf16 %v2444_v54  ;;  %v2445_v56 = vunpack.i.l.bf16 %v2444_v54  ;;  %vm1059_vm7 = vcmp.eq.s32.totalorder %v3279_v33, %v1023_v53  ;;  %v2506_v33 = vld [vmem:[%s3224_s18 + $0x60] ss:$20 sps:$4 sm:$0xff]   ;;  %s767_s18 = scalar_lea.vmem [#allocation10], %s3202_s23  ;;  %v1471_v17 = vmul.f32 %v3242_v2, %v3379_v5 }
 0x3f7   : > { %vm3353_vm9 = vmpackc.low %vm1059_vm7, %vm1058_vm8  ;;  %s1606_s28 = sshll.u32 %s767_s18, 4  ;;  %v1489_v23 = vmul.f32 %v2240_v11, %v3379_v5  ;;  %v1525_v24 = vmul.f32 %v2258_v12, %v3379_v5  ;;  %s3408_s28 = int_to_ptr.vmem [resolvable:$true] %s1606_s28 }
 0x3f8   : > { %v2171_v58 = vpack.c.bf16 %v2446_v55, %v2445_v56  ;;  %s2648_s9 = scalar_lea.vmem %s3408_s28, 128 }
 0x3f9   : > { %v3392_v10 = vpop.permute.xlu1 %1468  ;;  %p2649_p1 = scmp.ne.s32.totalorder %s3408_s28, %s2648_s9 }
 0x3fa   : > { %2172 = vmatmul.mubr.msk.bf16.vlgmr.msra.gmra.mrb[0].mxu1 %vm3353_vm9, %v2171_v58  ;;  %2175 = vmatmul.mubr.msk.bf16.vlgmr.msra.gmra.mrb[4].mxu0 %vm3353_vm9, %v2171_v58  ;;  %v1472_v21 = vmul.f32 %v3244_v3, %v3392_v10  ;;  %v1508_v22 = vmul.f32 %v2250_v9, %v3392_v10  ;;  %v1490_v2 = vmul.f32 %v2241_v13, %v3392_v10 }
 0x3fb   : > { %2313 = vmatpush3.bf16.msra.mxu1 %v2504_v57  ;;  %2328 = vmatprep.mubr.msk.bf16.mxu1 %vm2869_vm0, %v2868_v0  ;;  %v1526_v27 = vmul.f32 %v2259_v14, %v3392_v10  ;;  %p2650_p13 = pnand %p2649_p1, %p3721_p6 }
 0x3fc   : > { %2314 = vmatprep.subr.bf16.mxu1 %v2868_v0 }
 0x3fd   : > { %p2651_p11 = pneg %p2650_p13 }
 0x3ff   : > { %2315 = vmatpush3.bf16.msra.mxu1 %v2505_v60 }
 0x400   : > { %2316 = vmatprep.subr.bf16.mxu1 %v2868_v0 }
 0x403   : > { %2317 = vmatpush3.bf16.msra.mxu1 %v2506_v33 }
 0x404   : > { %2318 = vmatprep.subr.bf16.mxu1 %v2868_v0 }
 0x407   : > { %2319 = vmatpush3.bf16.msra.mxu1 %v2507_v61 }
 0x408   : > { %2320 = vmatprep.subr.bf16.mxu1 %v2868_v0 }
 0x40b   : > { %2321 = vmatpush3.bf16.msra.mxu1 %v2508_v62 }
 0x40c   : > { %2322 = vmatprep.subr.bf16.mxu1 %v2868_v0 }
 0x40f   : > { %2323 = vmatpush3.bf16.msra.mxu1 %v2509_v63 }
 0x410   : > { %2324 = vmatprep.subr.bf16.mxu1 %v2868_v0 }
 0x413   : > { %2325 = vmatpush3.bf16.msra.mxu1 %v2510_v1 }
 0x414   : > { %2326 = vmatprep.subr.bf16.mxu1 %v2868_v0  ;;  %v2249_v0 = vunpack.c.l.bf16 %v2248_v6 }
 0x416   : > { %v1507_v18 = vmul.f32 %v2249_v0, %v3379_v5 }
 0x417   : > { %2327 = vmatpush3.bf16.msra.mxu1 %v2511_v4 }
 0x41a   : > { %2329 = vmatmul.mubr.msk.bf16.vlgmr.msra.gmra.mrb[4].mxu1 %vm3353_vm9, %v2171_v58 }
 0x4cd   : > { %v1363_v15 = vpop.f32.mrb[0].mxu1  ;;  %v1406_v16 = vpop.f32.mrb[4].mxu0 }
 0x4ce   : > { %v1365_v19 = vpop.f32.mrb[1].mxu1  ;;  %v1408_v20 = vpop.f32.mrb[5].mxu0  ;;  %v1473_v3 = vadd.f32 %v1471_v17, %v1363_v15  ;;  %v1509_v28 = vadd.f32 %v1507_v18, %v1406_v16 }
 0x4cf   : > { %v1367_v25 = vpop.f32.mrb[2].mxu1  ;;  %v1410_v26 = vpop.f32.mrb[6].mxu0  ;;  %v1491_v34 = vadd.f32 %v1489_v23, %v1365_v19  ;;  %v1527_v35 = vadd.f32 %v1525_v24, %v1408_v20 }
 0x4d0   : > { %v1474_v29 = vadd.f32 %v1472_v21, %v1367_v25  ;;  %v1510_v30 = vadd.f32 %v1508_v22, %v1410_v26  ;;  %v1369_v31 = vpop.f32.mrb[3].mxu1  ;;  %v1412_v32 = vpop.f32.mrb[7].mxu0 }
 0x4d1   : > { %v1492_v36 = vadd.f32 %v1490_v2, %v1369_v31  ;;  %v1528_v37 = vadd.f32 %v1526_v27, %v1412_v32 }
 0x4d2   : > { %v2236_v38 = vpack.c.bf16 %v1474_v29, %v1473_v3  ;;  %v2254_v39 = vpack.c.bf16 %v1510_v30, %v1509_v28 }
 0x4d3   : > { %v2245_v40 = vpack.c.bf16 %v1492_v36, %v1491_v34  ;;  %v2263_v41 = vpack.c.bf16 %v1528_v37, %v1527_v35 }
 0x4d4   : > { %2237 = vst [vmem:[%s767_s18] sm:$0xff] %v2236_v38   ;;  %2255 = vst [vmem:[%s781_s22] sm:$0xff] %v2254_v39   ;;  %s2871_s18 = smov [#allocation10]  }
 0x4d5   : > { %2246 = vst [vmem:[%s3719_s8] sm:$0xff] %v2245_v40   ;;  %2264 = vst [vmem:[%s3720_s19] sm:$0xff] %v2263_v41   ;;  %s2652_s22 = sshll.u32 %s2871_s18, 4  ;;  %s2653_s22 = int_to_ptr.vmem [resolvable:$false] %s2652_s22 }
 0x4d6   : > { %s2654_s0 = scalar_lea.vmem %s2653_s22, 256  ;;  %p2655_p2 = scmp.lt.s32.totalorder %s3408_s28, %s2653_s22 }
 0x4d7   : > { %p2656_p5 = scmp.lt.s32.totalorder %s2654_s0, %s2648_s9 }
 0x4d9   : > { %p2657_p7 = por %p2656_p5, %p2655_p2 }
 0x4db   : > { %p2658_p3 = pnand %p2657_p7, %p2651_p11 }
 0x4dd   : > { %2661 = shalt.err (!%p2658_p3)
}
 0x4de   : > { %s2662_s8 = scalar_lea.hbm %s3428_s13, 128  ;;  %s2666_s11 = scalar_lea.hbm %s3714_s3, 256 }
 0x4df   : > { %p2663_p10 = scmp.ne.s32.totalorder %s3428_s13, %s2662_s8  ;;  %p2667_p4 = scmp.lt.u32.totalorder %s3428_s13, %s3714_s3 }
 0x4e0   : > { %p2668_p8 = scmp.lt.u32.totalorder %s2666_s11, %s2662_s8  ;;  %p2670_p1 = scmp.lt.u32.totalorder %s2662_s8, %s3428_s13 }
 0x4e1   : > { %p2664_p9 = pnand %p2663_p10, %p3721_p6 }
 0x4e2   : > { %p2669_p0 = por %p2668_p8, %p2667_p4 }
 0x4e3   : > { %p2665_p12 = pneg %p2664_p9 }
 0x4e4   : > { %p2671_p13 = por %p2670_p1, %p2669_p0 }
 0x4e6   : > { %p2672_p11 = pnand %p2671_p13, %p2665_p12 }
 0x4e8   : > { %2675 = shalt.err (!%p2672_p11)
}
 0x4e9   : > { %s2872_s9 = smov 64   ;;  %s2873_s18 = smov 4  }
 0x4ea   : > { %2343 = dma.vmem_to_hbm [thread:$0]  (%p3721_p6), %s3408_s28, 128, %s3428_s13, %s1567_s4, %s2872_s9, %s2872_s9, %s2873_s18  }
 0x4eb   : > { %s1572_s22 = scalar_lea.sflag [#allocation12], %s3211_s14  ;;  %s2676_s0 = scalar_lea.vmem %s3416_s12, 128 }
 0x4ec   : > { %p2677_p2 = scmp.ne.s32.totalorder %s3416_s12, %s2676_s0  ;;  %s2874_s8 = smov [#allocation11]  }
 0x4ed   : > { %s2680_s21 = sshll.u32 %s2874_s8, 4  ;;  %s2681_s21 = int_to_ptr.vmem [resolvable:$false] %s2680_s21 }
 0x4ee   : > { %p2678_p5 = pnand %p2677_p2, %p3721_p6  ;;  %s2682_s16 = scalar_lea.vmem %s2681_s21, 256 }
 0x4ef   : > { %p2683_p3 = scmp.lt.s32.totalorder %s3416_s12, %s2681_s21  ;;  %p2684_p10 = scmp.lt.s32.totalorder %s2682_s16, %s2676_s0 }
 0x4f0   : > { %p2679_p7 = pneg %p2678_p5 }
 0x4f1   : > { %p2685_p9 = por %p2684_p10, %p2683_p3 }
 0x4f3   : > { %p2686_p12 = pnand %p2685_p9, %p2679_p7 }
 0x4f5   : > { %2689 = shalt.err (!%p2686_p12)
}
 0x4f6   : > { %s2690_s20 = scalar_lea.hbm %s3434_s15, 128  ;;  %s2694_s4 = scalar_lea.hbm %s3715_s25, 256 }
 0x4f7   : > { %p2691_p4 = scmp.ne.s32.totalorder %s3434_s15, %s2690_s20  ;;  %p2695_p1 = scmp.lt.u32.totalorder %s3434_s15, %s3715_s25 }
 0x4f8   : > { %p2696_p13 = scmp.lt.u32.totalorder %s2694_s4, %s2690_s20  ;;  %p2698_p2 = scmp.lt.u32.totalorder %s2690_s20, %s3434_s15 }
 0x4f9   : > { %p2692_p8 = pnand %p2691_p4, %p3721_p6 }
 0x4fa   : > { %p2697_p11 = por %p2696_p13, %p2695_p1 }
 0x4fb   : > { %p2693_p0 = pneg %p2692_p8 }
 0x4fc   : > { %p2699_p5 = por %p2698_p2, %p2697_p11 }
 0x4fe   : > { %p2700_p7 = pnand %p2699_p5, %p2693_p0 }
 0x500   : > { %2703 = shalt.err (!%p2700_p7)
}
 0x501   : > { %2344 = dma.vmem_to_hbm [thread:$0]  (%p3721_p6), %s3416_s12, 128, %s3434_s15, %s1572_s22, %s2872_s9, %s2872_s9, %s2873_s18  }
 0x502   : > { %s1582_s19 = scalar_lea.sflag [#allocation15], %s3211_s14  ;;  %s2704_s0 = scalar_lea.vmem %s3422_s24, 128 }
 0x503   : > { %p2705_p3 = scmp.ne.s32.totalorder %s3422_s24, %s2704_s0  ;;  %s2875_s8 = smov [#allocation14]  }
 0x504   : > { %s2708_s21 = sshll.u32 %s2875_s8, 4  ;;  %s2709_s21 = int_to_ptr.vmem [resolvable:$false] %s2708_s21 }
 0x505   : > { %p2706_p10 = pnand %p2705_p3, %p3721_p6  ;;  %s2710_s16 = scalar_lea.vmem %s2709_s21, 256 }
 0x506   : > { %p2711_p12 = scmp.lt.s32.totalorder %s3422_s24, %s2709_s21  ;;  %p2712_p4 = scmp.lt.s32.totalorder %s2710_s16, %s2704_s0 }
 0x507   : > { %p2707_p9 = pneg %p2706_p10 }
 0x508   : > { %p2713_p8 = por %p2712_p4, %p2711_p12 }
 0x50a   : > { %p2714_p0 = pnand %p2713_p8, %p2707_p9 }
 0x50c   : > { %2717 = shalt.err (!%p2714_p0)
}
 0x50d   : > { %s2718_s12 = scalar_lea.hbm %s3444_s5, 128  ;;  %s2722_s28 = scalar_lea.hbm %s3716_s1, 256 }
 0x50e   : > { %p2719_p1 = scmp.ne.s32.totalorder %s3444_s5, %s2718_s12  ;;  %p2723_p2 = scmp.lt.u32.totalorder %s3444_s5, %s3716_s1 }
 0x50f   : > { %p2724_p5 = scmp.lt.u32.totalorder %s2722_s28, %s2718_s12  ;;  %p2726_p3 = scmp.lt.u32.totalorder %s2718_s12, %s3444_s5 }
 0x510   : > { %p2720_p13 = pnand %p2719_p1, %p3721_p6 }
 0x511   : > { %p2725_p7 = por %p2724_p5, %p2723_p2 }
 0x512   : > { %p2721_p11 = pneg %p2720_p13 }
 0x513   : > { %p2727_p10 = por %p2726_p3, %p2725_p7 }
 0x515   : > { %p2728_p9 = pnand %p2727_p10, %p2721_p11 }
 0x517   : > { %2731 = shalt.err (!%p2728_p9)
}
 0x518   : > { %2346 = dma.vmem_to_hbm [thread:$0]  (%p3721_p6), %s3422_s24, 128, %s3444_s5, %s1582_s19, %s2872_s9, %s2872_s9, %s2873_s18  }
 0x519   : > { %s2732_s11 = scalar_lea.vmem %s3411_s10, 128  ;;  %s2876_s29 = smov [#allocation13]  }
 0x51a   : > { %p2733_p12 = scmp.ne.s32.totalorder %s3411_s10, %s2732_s11  ;;  %s2736_s0 = sshll.u32 %s2876_s29, 4  ;;  %s2737_s0 = int_to_ptr.vmem [resolvable:$false] %s2736_s0 }
 0x51b   : > { %s2738_s8 = scalar_lea.vmem %s2737_s0, 256  ;;  %p2739_p0 = scmp.lt.s32.totalorder %s3411_s10, %s2737_s0 }
 0x51c   : > { %p2734_p4 = pnand %p2733_p12, %p3721_p6  ;;  %p2740_p1 = scmp.lt.s32.totalorder %s2738_s8, %s2732_s11 }
 0x51e   : > { %p2735_p8 = pneg %p2734_p4  ;;  %p2741_p13 = por %p2740_p1, %p2739_p0 }
 0x520   : > { %p2742_p11 = pnand %p2741_p13, %p2735_p8 }
 0x522   : > { %2745 = shalt.err (!%p2742_p11)
}
 0x523   : > { %s2746_s5 = scalar_lea.hbm %s3450_s7, 128  ;;  %s2750_s16 = scalar_lea.hbm %s3718_s6, 256 }
 0x524   : > { %p2747_p2 = scmp.ne.s32.totalorder %s3450_s7, %s2746_s5  ;;  %p2751_p3 = scmp.lt.u32.totalorder %s3450_s7, %s3718_s6 }
 0x525   : > { %p2752_p10 = scmp.lt.u32.totalorder %s2750_s16, %s2746_s5  ;;  %p2754_p12 = scmp.lt.u32.totalorder %s2746_s5, %s3450_s7 }
 0x526   : > { %p2748_p5 = pnand %p2747_p2, %p3721_p6 }
 0x527   : > { %p2753_p9 = por %p2752_p10, %p2751_p3 }
 0x528   : > { %p2749_p7 = pneg %p2748_p5 }
 0x529   : > { %p2755_p4 = por %p2754_p12, %p2753_p9 }
 0x52b   : > { %p2756_p8 = pnand %p2755_p4, %p2749_p7 }
 0x52d   : > { %2759 = shalt.err (!%p2756_p8)
}
 0x52e   : > { %2345 = dma.vmem_to_hbm [thread:$0]  (%p3721_p6), %s3411_s10, 128, %s3450_s7, %s1572_s22, %s2872_s9, %s2872_s9, %s2873_s18   ;;  %v1449_v45 = vpop.f32.mrb[4].mxu1 }
 0x52f   : > { %s3722_s13 = sld [smem:[#allocation33_spill]]  ;;  %v2330_v47 = vpop.f32.mrb[5].mxu1  ;;  %s795_s11 = scalar_lea.vmem [#allocation16], %s3202_s23 }
 0x530   : > { %v1452_v49 = vpop.f32.mrb[6].mxu1  ;;  %s1678_s29 = sshll.u32 %s795_s11, 4  ;;  %s3723_s10 = sld [smem:[#allocation43_spill]]  ;;  %s3570_s29 = int_to_ptr.vmem [resolvable:$true] %s1678_s29 }
 0x531   : > { %v2331_v52 = vpop.f32.mrb[7].mxu1  ;;  %s2760_s0 = scalar_lea.vmem %s3570_s29, 128  ;;  %s2877_s23 = smov [#allocation16]  }
 0x532   : > { %p2761_p0 = scmp.ne.s32.totalorder %s3570_s29, %s2760_s0  ;;  %s2764_s8 = sshll.u32 %s2877_s23, 4  ;;  %s2765_s8 = int_to_ptr.vmem [resolvable:$false] %s2764_s8 }
 0x533   : > { %s2766_s5 = scalar_lea.vmem %s2765_s8, 256  ;;  %p2767_p11 = scmp.lt.s32.totalorder %s3570_s29, %s2765_s8 }
 0x534   : > { %p2762_p1 = pnand %p2761_p0, %p3721_p6  ;;  %p2768_p2 = scmp.lt.s32.totalorder %s2766_s5, %s2760_s0 }
 0x535   : > { %s826_s4 = scalar_lea.vmem %s3722_s13, %s3236_s2 }
 0x536   : > { %v2266_v42 = vld [vmem:[%s826_s4] sm:$0xff]   ;;  %s3576_s22 = scalar_lea.hbm %s3723_s10, %s3420_s27  ;;  %p2763_p13 = pneg %p2762_p1 }
 0x537   : > { %v2267_v43 = vunpack.c.l.bf16 %v2266_v42  ;;  %v2268_v44 = vunpack.c.h.bf16 %v2266_v42  ;;  %p2769_p5 = por %p2768_p2, %p2767_p11 }
 0x539   : > { %v1543_v46 = vmul.f32 %v2267_v43, %v3379_v5  ;;  %v1544_v48 = vmul.f32 %v2268_v44, %v3392_v10  ;;  %p2770_p7 = pnand %p2769_p5, %p2763_p13 }
 0x53b   : > { %v1545_v50 = vadd.f32 %v1543_v46, %v1449_v45  ;;  %v1546_v51 = vadd.f32 %v1544_v48, %v1452_v49 }
 0x53d   : > { %v2272_v53 = vpack.c.bf16 %v1546_v51, %v1545_v50 }
 0x53f   : > { %2273 = vst [vmem:[%s795_s11] sm:$0xff] %v2272_v53  }
 0x540   : > { %2773 = shalt.err (!%p2770_p7)
}
 0x541   : > { %s2774_s27 = scalar_lea.hbm %s3576_s22, 128  ;;  %s2778_s16 = scalar_lea.hbm %s3723_s10, 256 }
 0x542   : > { %p2775_p3 = scmp.ne.s32.totalorder %s3576_s22, %s2774_s27  ;;  %p2779_p12 = scmp.lt.u32.totalorder %s3576_s22, %s3723_s10 }
 0x543   : > { %p2780_p4 = scmp.lt.u32.totalorder %s2778_s16, %s2774_s27  ;;  %p2782_p0 = scmp.lt.u32.totalorder %s2774_s27, %s3576_s22 }
 0x544   : > { %p2776_p10 = pnand %p2775_p3, %p3721_p6 }
 0x545   : > { %p2781_p8 = por %p2780_p4, %p2779_p12 }
 0x546   : > { %p2777_p9 = pneg %p2776_p10 }
 0x547   : > { %p2783_p1 = por %p2782_p0, %p2781_p8 }
 0x549   : > { %p2784_p13 = pnand %p2783_p1, %p2777_p9 }
 0x54b   : > { %2787 = shalt.err (!%p2784_p13)
}
 0x54c   : > { %2347 = dma.vmem_to_hbm [thread:$0]  (%p3721_p6), %s3570_s29, 128, %s3576_s22, %s1582_s19, %s2872_s9, %s2872_s9, %s2873_s18  }
 0x54d PF: > { %s3724_s20 = sld [smem:[#allocation23_spill]]  ;;  %s3725_s28 = sld [smem:[#allocation28_spill]] }
 0x54e   : > { %s3726_s13 = sld [smem:[#allocation25_spill]] }
 0x553   : > { %s1705_s4 = sand.u32 1, %s3724_s20   ;;  %p3727_p11 = scmp.ne.s32.totalorder %s3725_s28, 0 }
 0x554   : > { %p3728_p2 = scmp.ge.s32.totalorder %s3726_s13, 2  ;;  %s1706_s11 = scalar_lea.sflag [#allocation4], %s1705_s4 }
 0x556   : > { %p2367_p5 = pnand %p3728_p2, %p3727_p11 }
 0x558   : > { %2825 = dma.done.wait (!%p2367_p5), %s1706_s11, 128  }
 0x559   : > { %2827 = vsyncadd (!%p2367_p5), %s1706_s11, 4294967168  ;;  %s3729_s26 = sadd.s32 4294967294, %s3726_s13  }
 0x55a   : > { %s1714_s7 = sand.u32 1, %s3729_s26  }
 0x55b   : > { %s1715_s2 = scalar_lea.sflag [#allocation12], %s1714_s7 }
 0x55c   : > { %2829 = dma.done.wait (!%p2367_p5), %s1715_s2, 256  }
 0x55d   : > { %2831 = vsyncadd (!%p2367_p5), %s1715_s2, 4294967040  ;;  %s1733_s14 = scalar_lea.sflag [#allocation15], %s1714_s7 }
 0x55e   : > { %2833 = dma.done.wait (!%p2367_p5), %s1733_s14, 256  }
 0x55f   : > { %2835 = vsyncadd (!%p2367_p5), %s1733_s14, 4294967040  ;;  %s43_s18 = sadd.s32 1, %s3726_s13   ;;  %s3730_s9 = sld [smem:[#allocation24_spill]] }
 0x560   : > { %p40_p6 = scmp.ge.s32.totalorder %s43_s18, 4   ;;  %s3731_s15 = sld [smem:[#allocation27_spill]] }
 0x561   : > { %s3732_s19 = sld [smem:[#allocation26_spill]]  ;;  %s3733_s29 = smov %s2842_s30 }
 0x562   : > { %s3735_s16 = smov %s2854_s17  ;;  %42 = sbr.rel (!%p40_p6) target bundleno = 30 (0x1e), region = 229 }
 0x565   : > { %s3734_s30 = smov %s3730_s9 }
 0x567   : > { %s3736_s17 = smov %s3732_s19 }
 0x569   :  { %1747 = vsyncpa [#allocation3], 1 }
 0x56a   :  { %1749 = vsyncpa [#allocation3 + $0x1], 1 }
 0x56b   :  { %1750 = vsyncpa [#allocation6], 1 }
 0x56c   :  { %1752 = vsyncpa [#allocation6 + $0x1], 1 }
 0x56d   :  { %1753 = vsyncpa [#allocation9], 1 }
 0x56e   :  { %1755 = vsyncpa [#allocation9 + $0x1], 1 }
 0x56f   :  { %1756 = vsyncpa [#allocation4], 1 }
 0x570   :  { %1758 = vsyncpa [#allocation4 + $0x1], 1 }
 0x571   :  { %1759 = vsyncpa [#allocation12], 1 }
 0x572   :  { %1761 = vsyncpa [#allocation12 + $0x1], 1 }
 0x573   :  { %1762 = vsyncpa [#allocation15], 1 }
 0x574   :  { %1764 = vsyncpa [#allocation15 + $0x1], 1 }

</bundles_post_ra>
